<compile_context>
chip_gen: v6e
topology: v6e:2x2x1
jax: 0.10.0
libtpu: 0.0.40
codegen_flags: <defaults>
</compile_context>

<pallas_src>
import functools

import jax
import jax.numpy as jnp
from jax.experimental import pallas as pl
from jax.experimental.pallas import tpu as pltpu


def _round_up(a, m):
    return (a + m - 1) // m * m


def vae_kernel(
    x_ref, eps_ref,
    w1_ref, b1_ref,            # fc1:            input_dim -> 256
    w2_ref, b2_ref,            # fc2:            256 -> 128
    wmv_ref, bmv_ref,          # fused mean|logvar: 128 -> mv_out (>= 2*latent, padded to 128)
    dw1_ref, db1_ref,          # decode_fc1:     latent -> 128
    dw2_ref, db2_ref,          # decode_fc2:     128 -> 256
    dw3_ref, db3_ref,          # decode_fc3:     256 -> input_dim
    recon_ref, mulv_ref,       # outputs: [TB, input_dim] f32, [TB, mv_out] f32
    *, latent_dim,
):
    bf16 = jnp.bfloat16
    f32 = jnp.float32

    def lin(act_f32, w_ref, b_ref):
        # bf16 MXU operands, f32 accumulation, f32 bias add on the VPU.
        return (
            jnp.dot(act_f32.astype(bf16), w_ref[...], preferred_element_type=f32)
            + b_ref[...]
        )

    x = x_ref[...]

    # ---------------- encode ----------------
    h1 = jnp.maximum(lin(x, w1_ref, b1_ref), 0.0)
    h2 = jnp.maximum(lin(h1, w2_ref, b2_ref), 0.0)

    # Fused mean / log-var matmul -> one lane-dense [TB, mv_out] slab.
    mulv = lin(h2, wmv_ref, bmv_ref)
    mulv_ref[...] = mulv

    # ---------------- reparameterize ----------------
    mu = mulv[:, :latent_dim]
    logvar = mulv[:, latent_dim:2 * latent_dim]
    std = jnp.exp(0.5 * logvar)                      # EUP, f32
    z = mu + eps_ref[...] * std                      # VPU, f32

    # ---------------- decode ----------------
    h3 = jnp.maximum(lin(z, dw1_ref, db1_ref), 0.0)
    h4 = jnp.maximum(lin(h3, dw2_ref, db2_ref), 0.0)
    recon_ref[...] = lin(h4, dw3_ref, db3_ref)


def vae_forward(x_flat, eps, params, *, block_b=128):
    """x_flat: [B, input_dim] f32, eps: [B, latent_dim] f32 (~N(0,1)).

    Returns (reconstruction [B, input_dim], mu [B, latent], logvar [B, latent])."""
    B, input_dim = x_flat.shape
    latent_dim = eps.shape[1]
    mv_out = params["wmv"].shape[1]                  # 2*latent padded to >=128 lanes

    # Batch tiling: tile is a multiple of 8 sublanes, capped at block_b rows.
    TB = min(block_b, _round_up(B, 8))
    padded_B = _round_up(B, TB)
    if padded_B != B:
        x_flat = jnp.pad(x_flat, ((0, padded_B - B), (0, 0)))
        eps = jnp.pad(eps, ((0, padded_B - B), (0, 0)))
    grid = (pl.cdiv(padded_B, TB),)

    weights = (
        params["w1"], params["b1"],
        params["w2"], params["b2"],
        params["wmv"], params["bmv"],
        params["dw1"], params["db1"],
        params["dw2"], params["db2"],
        params["dw3"], params["db3"],
    )
    args = (x_flat, eps) + weights

    # Activations stream per grid step; weights/biases get a constant index_map
    # so they are fetched once and stay VMEM-resident.
    batch_spec = lambda width: pl.BlockSpec((TB, width), lambda i: (i, 0))
    const_spec = lambda arr: pl.BlockSpec(arr.shape, lambda i: (0, 0))
    in_specs = [batch_spec(input_dim), batch_spec(latent_dim)] + [
        const_spec(w) for w in weights
    ]
    out_specs = (batch_spec(input_dim), batch_spec(mv_out))

    out_shapes = (
        jax.ShapeDtypeStruct((padded_B, input_dim), jnp.float32),  # reconstruction
        jax.ShapeDtypeStruct((padded_B, mv_out), jnp.float32),     # mu|logvar slab
    )

    flops = 2 * padded_B * (
        input_dim * 256 + 256 * 128 + 128 * mv_out
        + latent_dim * 128 + 128 * 256 + 256 * input_dim
    )
    bytes_accessed = int(
        sum(a.size * a.dtype.itemsize for a in args)
        + padded_B * input_dim * 4 + padded_B * mv_out * 4
    )

    recon_p, mulv_p = pl.pallas_call(
        functools.partial(vae_kernel, latent_dim=latent_dim),
        out_shape=out_shapes,
        grid=grid,
        in_specs=in_specs,
        out_specs=out_specs,
        compiler_params=pltpu.CompilerParams(
            dimension_semantics=("parallel",),
            vmem_limit_bytes=64 * 1024 * 1024,
        ),
        cost_estimate=pl.CostEstimate(
            flops=flops,
            transcendentals=padded_B * latent_dim,
            bytes_accessed=bytes_accessed,
        ),
    )(*args)

    recon = recon_p[:B]
    mu = mulv_p[:B, :latent_dim]
    logvar = mulv_p[:B, latent_dim:2 * latent_dim]
    return recon, mu, logvar


def init_params(key, input_dim, latent_dim):
    """PyTorch-Linear-style init U(-1/sqrt(fan_in), 1/sqrt(fan_in)).
    Weights stored pre-transposed [in, out] in bf16; biases [1, out] in f32.
    fc_mean / fc_log_var are concatenated and zero-padded to a lane-dense width."""
    def linear(kw, kb, fan_in, fan_out):
        bound = 1.0 / float(fan_in) ** 0.5
        w = jax.random.uniform(kw, (fan_in, fan_out), jnp.float32, -bound, bound)
        b = jax.random.uniform(kb, (1, fan_out), jnp.float32, -bound, bound)
        return w, b

    keys = jax.random.split(key, 14)
    w1, b1 = linear(keys[0], keys[1], input_dim, 256)
    w2, b2 = linear(keys[2], keys[3], 256, 128)
    wm, bm = linear(keys[4], keys[5], 128, latent_dim)
    wv, bv = linear(keys[6], keys[7], 128, latent_dim)
    dw1, db1 = linear(keys[8], keys[9], latent_dim, 128)
    dw2, db2 = linear(keys[10], keys[11], 128, 256)
    dw3, db3 = linear(keys[12], keys[13], 256, input_dim)

    # Fuse mean|logvar and pad the output width to a multiple of 128 lanes.
    mv_out = max(128, _round_up(2 * latent_dim, 128))
    wmv = jnp.zeros((128, mv_out), jnp.float32)
    wmv = wmv.at[:, :latent_dim].set(wm).at[:, latent_dim:2 * latent_dim].set(wv)
    bmv = jnp.zeros((1, mv_out), jnp.float32)
    bmv = bmv.at[:, :latent_dim].set(bm).at[:, latent_dim:2 * latent_dim].set(bv)

    bf16 = jnp.bfloat16
    return {
        "w1": w1.astype(bf16), "b1": b1,
        "w2": w2.astype(bf16), "b2": b2,
        "wmv": wmv.astype(bf16), "bmv": bmv,
        "dw1": dw1.astype(bf16), "db1": db1,
        "dw2": dw2.astype(bf16), "db2": db2,
        "dw3": dw3.astype(bf16), "db3": db3,
    }


if __name__ == "__main__":
    # Small shapes consistent with the module: image-like input flattened to input_dim.
    B, C, H, W = 2, 4, 16, 16
    input_dim = C * H * W          # 1024
    latent_dim = 32

    key = jax.random.PRNGKey(0)
    k_x, k_eps, k_params = jax.random.split(key, 3)

    x = jax.random.normal(k_x, (B, C, H, W), dtype=jnp.float32)
    x_flat = x.reshape(-1, input_dim)                       # x.view(-1, input_dim)

    # eps ~ N(0,1) for the reparameterization trick (torch.randn_like).
    eps = jax.random.normal(k_eps, (B, latent_dim), dtype=jnp.float32)

    params = init_params(k_params, input_dim, latent_dim)

    recon, mu, logvar = vae_forward(x_flat, eps, params)
    jax.block_until_ready((recon, mu, logvar))

    # Pure-JAX reference of the same math (bf16 MXU operands, f32 accumulation).
    def ref_forward(xf, ep, p):
        bf16, f32 = jnp.bfloat16, jnp.float32

        def lin(a, w, b):
            return jnp.dot(a.astype(bf16), w, preferred_element_type=f32) + b

        h1 = jnp.maximum(lin(xf, p["w1"], p["b1"]), 0.0)
        h2 = jnp.maximum(lin(h1, p["w2"], p["b2"]), 0.0)
        mulv = lin(h2, p["wmv"], p["bmv"])
        mu_r = mulv[:, :latent_dim]
        lv_r = mulv[:, latent_dim:2 * latent_dim]
        z = mu_r + ep * jnp.exp(0.5 * lv_r)
        h3 = jnp.maximum(lin(z, p["dw1"], p["db1"]), 0.0)
        h4 = jnp.maximum(lin(h3, p["dw2"], p["db2"]), 0.0)
        return lin(h4, p["dw3"], p["db3"]), mu_r, lv_r

    r_ref, mu_ref_v, lv_ref_v = ref_forward(x_flat, eps, params)
    assert recon.shape == (B, input_dim)
    assert mu.shape == (B, latent_dim)
    assert logvar.shape == (B, latent_dim)
    assert jnp.allclose(recon, r_ref, atol=1e-2, rtol=1e-2)
    assert jnp.allclose(mu, mu_ref_v, atol=1e-2, rtol=1e-2)
    assert jnp.allclose(logvar, lv_ref_v, atol=1e-2, rtol=1e-2)

    print("KERNEL_OK")
</pallas_src>

<mosaic_0001>
module attributes {stable_mosaic.version = 11 : i64} {
  func.func @vae_kernel(%arg0: i32, %arg1: memref<8x1024xf32, #tpu.memory_space<vmem>>, %arg2: memref<8x32xf32, #tpu.memory_space<vmem>>, %arg3: memref<1024x256xbf16, #tpu.memory_space<vmem>>, %arg4: memref<1x256xf32, #tpu.memory_space<vmem>>, %arg5: memref<256x128xbf16, #tpu.memory_space<vmem>>, %arg6: memref<1x128xf32, #tpu.memory_space<vmem>>, %arg7: memref<128x128xbf16, #tpu.memory_space<vmem>>, %arg8: memref<1x128xf32, #tpu.memory_space<vmem>>, %arg9: memref<32x128xbf16, #tpu.memory_space<vmem>>, %arg10: memref<1x128xf32, #tpu.memory_space<vmem>>, %arg11: memref<128x256xbf16, #tpu.memory_space<vmem>>, %arg12: memref<1x256xf32, #tpu.memory_space<vmem>>, %arg13: memref<256x1024xbf16, #tpu.memory_space<vmem>>, %arg14: memref<1x1024xf32, #tpu.memory_space<vmem>>, %arg15: memref<8x1024xf32, #tpu.memory_space<vmem>>, %arg16: memref<8x128xf32, #tpu.memory_space<vmem>>) attributes {dimension_semantics = [#tpu.dimension_semantics<parallel>], iteration_bounds = array<i64: 1>, scalar_prefetch = 0 : i64, scratch_operands = 0 : i64, tpu.core_type = #tpu.core_type<tc>, window_params = [{transform_indices = @transform_0, window_bounds = array<i64: 8, 1024>}, {transform_indices = @transform_1, window_bounds = array<i64: 8, 32>}, {pipeline_mode = #tpu.pipeline_mode<synchronous>, transform_indices = @transform_2, window_bounds = array<i64: 1024, 256>}, {pipeline_mode = #tpu.pipeline_mode<synchronous>, transform_indices = @transform_3, window_bounds = array<i64: 1, 256>}, {pipeline_mode = #tpu.pipeline_mode<synchronous>, transform_indices = @transform_4, window_bounds = array<i64: 256, 128>}, {pipeline_mode = #tpu.pipeline_mode<synchronous>, transform_indices = @transform_5, window_bounds = array<i64: 1, 128>}, {pipeline_mode = #tpu.pipeline_mode<synchronous>, transform_indices = @transform_6, window_bounds = array<i64: 128, 128>}, {pipeline_mode = #tpu.pipeline_mode<synchronous>, transform_indices = @transform_7, window_bounds = array<i64: 1, 128>}, {pipeline_mode = #tpu.pipeline_mode<synchronous>, transform_indices = @transform_8, window_bounds = array<i64: 32, 128>}, {pipeline_mode = #tpu.pipeline_mode<synchronous>, transform_indices = @transform_9, window_bounds = array<i64: 1, 128>}, {pipeline_mode = #tpu.pipeline_mode<synchronous>, transform_indices = @transform_10, window_bounds = array<i64: 128, 256>}, {pipeline_mode = #tpu.pipeline_mode<synchronous>, transform_indices = @transform_11, window_bounds = array<i64: 1, 256>}, {pipeline_mode = #tpu.pipeline_mode<synchronous>, transform_indices = @transform_12, window_bounds = array<i64: 256, 1024>}, {pipeline_mode = #tpu.pipeline_mode<synchronous>, transform_indices = @transform_13, window_bounds = array<i64: 1, 1024>}, {transform_indices = @transform_14, window_bounds = array<i64: 8, 1024>}, {transform_indices = @transform_15, window_bounds = array<i64: 8, 128>}]} {
    %c0 = arith.constant 0 : index
    %c0_0 = arith.constant 0 : index
    %0 = vector.load %arg1[%c0, %c0_0] : memref<8x1024xf32, #tpu.memory_space<vmem>>, vector<8x1024xf32>
    %1 = arith.truncf %0 : vector<8x1024xf32> to vector<8x1024xbf16>
    %c0_1 = arith.constant 0 : index
    %c0_2 = arith.constant 0 : index
    %2 = vector.load %arg3[%c0_1, %c0_2] : memref<1024x256xbf16, #tpu.memory_space<vmem>>, vector<1024x256xbf16>
    %cst = arith.constant dense<0.000000e+00> : vector<8x256xf32>
    %3 = tpu.matmul %1, %2, %cst {dimension_numbers = #tpu.dot_dimension_numbers<[1], [0], [0], [1], [0, 0, 1, 1], [], []>} : vector<8x1024xbf16>, vector<1024x256xbf16>, vector<8x256xf32> -> vector<8x256xf32>
    %c0_3 = arith.constant 0 : index
    %c0_4 = arith.constant 0 : index
    %4 = vector.load %arg4[%c0_3, %c0_4] : memref<1x256xf32, #tpu.memory_space<vmem>>, vector<1x256xf32>
    %5 = vector.broadcast %4 : vector<1x256xf32> to vector<8x256xf32>
    %6 = arith.addf %3, %5 : vector<8x256xf32>
    %cst_5 = arith.constant 0.000000e+00 : f32
    %7 = vector.broadcast %cst_5 : f32 to vector<8x256xf32>
    %8 = arith.maximumf %6, %7 : vector<8x256xf32>
    %9 = arith.truncf %8 : vector<8x256xf32> to vector<8x256xbf16>
    %c0_6 = arith.constant 0 : index
    %c0_7 = arith.constant 0 : index
    %10 = vector.load %arg5[%c0_6, %c0_7] : memref<256x128xbf16, #tpu.memory_space<vmem>>, vector<256x128xbf16>
    %cst_8 = arith.constant dense<0.000000e+00> : vector<8x128xf32>
    %11 = tpu.matmul %9, %10, %cst_8 {dimension_numbers = #tpu.dot_dimension_numbers<[1], [0], [0], [1], [0, 0, 1, 1], [], []>} : vector<8x256xbf16>, vector<256x128xbf16>, vector<8x128xf32> -> vector<8x128xf32>
    %c0_9 = arith.constant 0 : index
    %c0_10 = arith.constant 0 : index
    %12 = vector.load %arg6[%c0_9, %c0_10] : memref<1x128xf32, #tpu.memory_space<vmem>>, vector<1x128xf32>
    %13 = vector.broadcast %12 : vector<1x128xf32> to vector<8x128xf32>
    %14 = arith.addf %11, %13 : vector<8x128xf32>
    %cst_11 = arith.constant 0.000000e+00 : f32
    %15 = vector.broadcast %cst_11 : f32 to vector<8x128xf32>
    %16 = arith.maximumf %14, %15 : vector<8x128xf32>
    %17 = arith.truncf %16 : vector<8x128xf32> to vector<8x128xbf16>
    %c0_12 = arith.constant 0 : index
    %c0_13 = arith.constant 0 : index
    %18 = vector.load %arg7[%c0_12, %c0_13] : memref<128x128xbf16, #tpu.memory_space<vmem>>, vector<128x128xbf16>
    %cst_14 = arith.constant dense<0.000000e+00> : vector<8x128xf32>
    %19 = tpu.matmul %17, %18, %cst_14 {dimension_numbers = #tpu.dot_dimension_numbers<[1], [0], [0], [1], [0, 0, 1, 1], [], []>} : vector<8x128xbf16>, vector<128x128xbf16>, vector<8x128xf32> -> vector<8x128xf32>
    %c0_15 = arith.constant 0 : index
    %c0_16 = arith.constant 0 : index
    %20 = vector.load %arg8[%c0_15, %c0_16] : memref<1x128xf32, #tpu.memory_space<vmem>>, vector<1x128xf32>
    %21 = vector.broadcast %20 : vector<1x128xf32> to vector<8x128xf32>
    %22 = arith.addf %19, %21 : vector<8x128xf32>
    %c0_17 = arith.constant 0 : index
    %c0_18 = arith.constant 0 : index
    %23 = vector.load %arg16[%c0_17, %c0_18] : memref<8x128xf32, #tpu.memory_space<vmem>>, vector<8x128xf32>
    tpu.vector_store %arg16[%c0_17, %c0_18], %22 {strides = array<i32>} : memref<8x128xf32, #tpu.memory_space<vmem>>, vector<8x128xf32>,
    %24 = vector.extract_strided_slice %22 {offsets = [0, 0], sizes = [8, 32], strides = [1, 1]} : vector<8x128xf32> to vector<8x32xf32>
    %25 = vector.extract_strided_slice %22 {offsets = [0, 32], sizes = [8, 32], strides = [1, 1]} : vector<8x128xf32> to vector<8x32xf32>
    %cst_19 = arith.constant 5.000000e-01 : f32
    %26 = vector.broadcast %cst_19 : f32 to vector<8x32xf32>
    %27 = arith.mulf %26, %25 : vector<8x32xf32>
    %28 = math.exp %27 : vector<8x32xf32>
    %c0_20 = arith.constant 0 : index
    %c0_21 = arith.constant 0 : index
    %29 = vector.load %arg2[%c0_20, %c0_21] : memref<8x32xf32, #tpu.memory_space<vmem>>, vector<8x32xf32>
    %30 = arith.mulf %29, %28 : vector<8x32xf32>
    %31 = arith.addf %24, %30 : vector<8x32xf32>
    %32 = arith.truncf %31 : vector<8x32xf32> to vector<8x32xbf16>
    %c0_22 = arith.constant 0 : index
    %c0_23 = arith.constant 0 : index
    %33 = vector.load %arg9[%c0_22, %c0_23] : memref<32x128xbf16, #tpu.memory_space<vmem>>, vector<32x128xbf16>
    %cst_24 = arith.constant dense<0.000000e+00> : vector<8x128xf32>
    %34 = tpu.matmul %32, %33, %cst_24 {dimension_numbers = #tpu.dot_dimension_numbers<[1], [0], [0], [1], [0, 0, 1, 1], [], []>} : vector<8x32xbf16>, vector<32x128xbf16>, vector<8x128xf32> -> vector<8x128xf32>
    %c0_25 = arith.constant 0 : index
    %c0_26 = arith.constant 0 : index
    %35 = vector.load %arg10[%c0_25, %c0_26] : memref<1x128xf32, #tpu.memory_space<vmem>>, vector<1x128xf32>
    %36 = vector.broadcast %35 : vector<1x128xf32> to vector<8x128xf32>
    %37 = arith.addf %34, %36 : vector<8x128xf32>
    %cst_27 = arith.constant 0.000000e+00 : f32
    %38 = vector.broadcast %cst_27 : f32 to vector<8x128xf32>
    %39 = arith.maximumf %37, %38 : vector<8x128xf32>
    %40 = arith.truncf %39 : vector<8x128xf32> to vector<8x128xbf16>
    %c0_28 = arith.constant 0 : index
    %c0_29 = arith.constant 0 : index
    %41 = vector.load %arg11[%c0_28, %c0_29] : memref<128x256xbf16, #tpu.memory_space<vmem>>, vector<128x256xbf16>
    %cst_30 = arith.constant dense<0.000000e+00> : vector<8x256xf32>
    %42 = tpu.matmul %40, %41, %cst_30 {dimension_numbers = #tpu.dot_dimension_numbers<[1], [0], [0], [1], [0, 0, 1, 1], [], []>} : vector<8x128xbf16>, vector<128x256xbf16>, vector<8x256xf32> -> vector<8x256xf32>
    %c0_31 = arith.constant 0 : index
    %c0_32 = arith.constant 0 : index
    %43 = vector.load %arg12[%c0_31, %c0_32] : memref<1x256xf32, #tpu.memory_space<vmem>>, vector<1x256xf32>
    %44 = vector.broadcast %43 : vector<1x256xf32> to vector<8x256xf32>
    %45 = arith.addf %42, %44 : vector<8x256xf32>
    %cst_33 = arith.constant 0.000000e+00 : f32
    %46 = vector.broadcast %cst_33 : f32 to vector<8x256xf32>
    %47 = arith.maximumf %45, %46 : vector<8x256xf32>
    %48 = arith.truncf %47 : vector<8x256xf32> to vector<8x256xbf16>
    %c0_34 = arith.constant 0 : index
    %c0_35 = arith.constant 0 : index
    %49 = vector.load %arg13[%c0_34, %c0_35] : memref<256x1024xbf16, #tpu.memory_space<vmem>>, vector<256x1024xbf16>
    %cst_36 = arith.constant dense<0.000000e+00> : vector<8x1024xf32>
    %50 = tpu.matmul %48, %49, %cst_36 {dimension_numbers = #tpu.dot_dimension_numbers<[1], [0], [0], [1], [0, 0, 1, 1], [], []>} : vector<8x256xbf16>, vector<256x1024xbf16>, vector<8x1024xf32> -> vector<8x1024xf32>
    %c0_37 = arith.constant 0 : index
    %c0_38 = arith.constant 0 : index
    %51 = vector.load %arg14[%c0_37, %c0_38] : memref<1x1024xf32, #tpu.memory_space<vmem>>, vector<1x1024xf32>
    %52 = vector.broadcast %51 : vector<1x1024xf32> to vector<8x1024xf32>
    %53 = arith.addf %50, %52 : vector<8x1024xf32>
    %c0_39 = arith.constant 0 : index
    %c0_40 = arith.constant 0 : index
    %54 = vector.load %arg15[%c0_39, %c0_40] : memref<8x1024xf32, #tpu.memory_space<vmem>>, vector<8x1024xf32>
    tpu.vector_store %arg15[%c0_39, %c0_40], %53 {strides = array<i32>} : memref<8x1024xf32, #tpu.memory_space<vmem>>, vector<8x1024xf32>,
    return
  }
  func.func @transform_0(%arg0: i32) -> (i32, i32) {
    %c0_i32 = arith.constant 0 : i32
    %c0_i32_0 = arith.constant 0 : i32
    return %arg0, %c0_i32 : i32, i32
  }
  func.func @transform_1(%arg0: i32) -> (i32, i32) {
    %c0_i32 = arith.constant 0 : i32
    %c0_i32_0 = arith.constant 0 : i32
    return %arg0, %c0_i32 : i32, i32
  }
  func.func @transform_2(%arg0: i32) -> (i32, i32) {
    %c0_i32 = arith.constant 0 : i32
    %c0_i32_0 = arith.constant 0 : i32
    %c0_i32_1 = arith.constant 0 : i32
    return %c0_i32, %c0_i32_0 : i32, i32
  }
  func.func @transform_3(%arg0: i32) -> (i32, i32) {
    %c0_i32 = arith.constant 0 : i32
    %c0_i32_0 = arith.constant 0 : i32
    %c0_i32_1 = arith.constant 0 : i32
    return %c0_i32, %c0_i32_0 : i32, i32
  }
  func.func @transform_4(%arg0: i32) -> (i32, i32) {
    %c0_i32 = arith.constant 0 : i32
    %c0_i32_0 = arith.constant 0 : i32
    %c0_i32_1 = arith.constant 0 : i32
    return %c0_i32, %c0_i32_0 : i32, i32
  }
  func.func @transform_5(%arg0: i32) -> (i32, i32) {
    %c0_i32 = arith.constant 0 : i32
    %c0_i32_0 = arith.constant 0 : i32
    %c0_i32_1 = arith.constant 0 : i32
    return %c0_i32, %c0_i32_0 : i32, i32
  }
  func.func @transform_6(%arg0: i32) -> (i32, i32) {
    %c0_i32 = arith.constant 0 : i32
    %c0_i32_0 = arith.constant 0 : i32
    %c0_i32_1 = arith.constant 0 : i32
    return %c0_i32, %c0_i32_0 : i32, i32
  }
  func.func @transform_7(%arg0: i32) -> (i32, i32) {
    %c0_i32 = arith.constant 0 : i32
    %c0_i32_0 = arith.constant 0 : i32
    %c0_i32_1 = arith.constant 0 : i32
    return %c0_i32, %c0_i32_0 : i32, i32
  }
  func.func @transform_8(%arg0: i32) -> (i32, i32) {
    %c0_i32 = arith.constant 0 : i32
    %c0_i32_0 = arith.constant 0 : i32
    %c0_i32_1 = arith.constant 0 : i32
    return %c0_i32, %c0_i32_0 : i32, i32
  }
  func.func @transform_9(%arg0: i32) -> (i32, i32) {
    %c0_i32 = arith.constant 0 : i32
    %c0_i32_0 = arith.constant 0 : i32
    %c0_i32_1 = arith.constant 0 : i32
    return %c0_i32, %c0_i32_0 : i32, i32
  }
  func.func @transform_10(%arg0: i32) -> (i32, i32) {
    %c0_i32 = arith.constant 0 : i32
    %c0_i32_0 = arith.constant 0 : i32
    %c0_i32_1 = arith.constant 0 : i32
    return %c0_i32, %c0_i32_0 : i32, i32
  }
  func.func @transform_11(%arg0: i32) -> (i32, i32) {
    %c0_i32 = arith.constant 0 : i32
    %c0_i32_0 = arith.constant 0 : i32
    %c0_i32_1 = arith.constant 0 : i32
    return %c0_i32, %c0_i32_0 : i32, i32
  }
  func.func @transform_12(%arg0: i32) -> (i32, i32) {
    %c0_i32 = arith.constant 0 : i32
    %c0_i32_0 = arith.constant 0 : i32
    %c0_i32_1 = arith.constant 0 : i32
    return %c0_i32, %c0_i32_0 : i32, i32
  }
  func.func @transform_13(%arg0: i32) -> (i32, i32) {
    %c0_i32 = arith.constant 0 : i32
    %c0_i32_0 = arith.constant 0 : i32
    %c0_i32_1 = arith.constant 0 : i32
    return %c0_i32, %c0_i32_0 : i32, i32
  }
  func.func @transform_14(%arg0: i32) -> (i32, i32) {
    %c0_i32 = arith.constant 0 : i32
    %c0_i32_0 = arith.constant 0 : i32
    return %arg0, %c0_i32 : i32, i32
  }
  func.func @transform_15(%arg0: i32) -> (i32, i32) {
    %c0_i32 = arith.constant 0 : i32
    %c0_i32_0 = arith.constant 0 : i32
    return %arg0, %c0_i32 : i32, i32
  }
}

</mosaic_0001>

<bundles_post_ra>
// kernel: tpu_custom_call.1
= control target key start
LH: loop header
LB: loop body
LE: loop exit
PB: predicated region body
PF: predicated region fallthrough
CT: control target
= control target key end

     0   :  { %21 = vsyncpa [#allocation3], 0  ;;  %s3706_s0 = inlined_call_operand.hbm [shape: f32[8,1024], index: 0, kind: input, shape index: {}]   ;;  %s3707_s1 = inlined_call_operand.hbm [shape: f32[8,32], index: 1, kind: input, shape index: {}]   ;;  %s3708_s2 = inlined_call_operand.hbm [shape: bf16[1024,256], index: 2, kind: input, shape index: {}]   ;;  %s3709_s3 = inlined_call_operand.vmem [shape: f32[1,256], index: 3, kind: input, shape index: {}]   ;;  %s3710_s4 = inlined_call_operand.hbm [shape: bf16[256,128], index: 4, kind: input, shape index: {}]   ;;  %s3711_s5 = inlined_call_operand.vmem [shape: f32[1,128], index: 5, kind: input, shape index: {}]   ;;  %s3712_s6 = inlined_call_operand.hbm [shape: bf16[128,128], index: 6, kind: input, shape index: {}]   ;;  %s3713_s7 = inlined_call_operand.vmem [shape: f32[1,128], index: 7, kind: input, shape index: {}]   ;;  %s3714_s8 = inlined_call_operand.hbm [shape: bf16[32,128], index: 8, kind: input, shape index: {}]   ;;  %s3715_s9 = inlined_call_operand.vmem [shape: f32[1,128], index: 9, kind: input, shape index: {}]   ;;  %s3716_s10 = inlined_call_operand.hbm [shape: bf16[128,256], index: 10, kind: input, shape index: {}]   ;;  %s3717_s11 = inlined_call_operand.vmem [shape: f32[1,256], index: 11, kind: input, shape index: {}]   ;;  %s3718_s12 = inlined_call_operand.hbm [shape: bf16[256,1024], index: 12, kind: input, shape index: {}]   ;;  %s3719_s13 = inlined_call_operand.vmem [shape: f32[1,1024], index: 13, kind: input, shape index: {}]   ;;  %s3720_s14 = inlined_call_operand.hbm [shape: f32[8,1024], index: 14, kind: output, shape index: {0}]   ;;  %s3721_s15 = inlined_call_operand.hbm [shape: f32[8,128], index: 15, kind: output, shape index: {1}]  }
   0x1   :  { %22 = vsyncpa [#allocation6], 0 }
   0x2   :  { %23 = vsyncpa [#allocation9], 0 }
   0x3   :  { %24 = vsyncpa [#allocation12], 0 }
   0x4   :  { %25 = vsyncpa [#allocation15], 0 }
   0x5   :  { %26 = vsyncpa [#allocation4], 0 }
   0x6   :  { %27 = vsyncpa [#allocation18], 0  ;;  %s3500_s18 = smov [#allocation5]   ;;  %s3501_s20 = smov [#allocation8]  }
   0x7   :  { %s44_s19 = sshll.u32 %s3500_s18, 4  ;;  %s67_s21 = sshll.u32 %s3501_s20, 4  ;;  %s45_s19 = int_to_ptr.vmem [resolvable:$true] %s44_s19  ;;  %s68_s21 = int_to_ptr.vmem [resolvable:$true] %s67_s21 }
   0x8   :  { %s3294_s22 = scalar_lea.vmem %s45_s19, 128  ;;  %p3299_p1 = scmp.lt.s32.totalorder %s45_s19, %s45_s19 }
   0x9   :  { %p3295_p0 = scmp.ne.s32.totalorder %s45_s19, %s3294_s22  ;;  %p3300_p2 = scmp.lt.s32.totalorder %s3294_s22, %s3294_s22 }
   0xb   :  { %p3301_p3 = por %p3300_p2, %p3299_p1 }
   0xd   :  { %p3302_p4 = pnand %p3301_p3, %p3295_p0 }
   0xf   :  { %3305 = shalt.err (!%p3302_p4)
}
  0x10   :  { %47 = dma.hbm_to_vmem [thread:$0]  %s3707_s1, 128, %s45_s19, [#allocation6]  }
  0x11   :  { %s3314_s25 = scalar_lea.vmem %s68_s21, 2048  ;;  %p3319_p6 = scmp.lt.s32.totalorder %s68_s21, %s68_s21 }
  0x12   :  { %p3315_p5 = scmp.ne.s32.totalorder %s68_s21, %s3314_s25  ;;  %p3320_p7 = scmp.lt.s32.totalorder %s3314_s25, %s3314_s25 }
  0x14   :  { %p3321_p8 = por %p3320_p7, %p3319_p6 }
  0x16   :  { %p3322_p9 = pnand %p3321_p8, %p3315_p5 }
  0x18   :  { %3325 = shalt.err (!%p3322_p9)
}
  0x19   :  { %s3502_s26 = smov 64   ;;  %s3503_s27 = smov 4  }
  0x1a   :  { %73 = dma.hbm_to_vmem [thread:$0]  %s3710_s4, 2048, %s68_s21, [#allocation9], %s3502_s26, %s3502_s26, %s3503_s27  }
  0x1b   :  { %s3504_s30 = smov [#allocation11]   ;;  %s3505_s17 = smov [#allocation2]  }
  0x1c   :  { %s95_s16 = sshll.u32 %s3504_s30, 4  ;;  %s34_s1 = sshll.u32 %s3505_s17, 4  ;;  %s96_s16 = int_to_ptr.vmem [resolvable:$true] %s95_s16  ;;  %s35_s1 = int_to_ptr.vmem [resolvable:$true] %s34_s1 }
  0x1d   :  { %s3334_s18 = scalar_lea.vmem %s96_s16, 256  ;;  %p3339_p11 = scmp.lt.s32.totalorder %s96_s16, %s96_s16 }
  0x1e   :  { %p3335_p10 = scmp.ne.s32.totalorder %s96_s16, %s3334_s18  ;;  %p3340_p12 = scmp.lt.s32.totalorder %s3334_s18, %s3334_s18 }
  0x20   :  { %p3341_p13 = por %p3340_p12, %p3339_p11 }
  0x22   :  { %p3342_p0 = pnand %p3341_p13, %p3335_p10 }
  0x24   :  { %3345 = shalt.err (!%p3342_p0)
}
  0x25   :  { %101 = dma.hbm_to_vmem [thread:$0]  %s3714_s8, 256, %s96_s16, [#allocation12], %s3502_s26, %s3502_s26, %s3503_s27  }
  0x26   :  { %s3354_s4 = scalar_lea.vmem %s35_s1, 1024  ;;  %p3359_p2 = scmp.lt.s32.totalorder %s35_s1, %s35_s1 }
  0x27   :  { %p3355_p1 = scmp.ne.s32.totalorder %s35_s1, %s3354_s4  ;;  %p3360_p3 = scmp.lt.s32.totalorder %s3354_s4, %s3354_s4 }
  0x29   :  { %p3361_p4 = por %p3360_p3, %p3359_p2 }
  0x2b   :  { %p3362_p5 = pnand %p3361_p4, %p3355_p1 }
  0x2d   :  { %3365 = shalt.err (!%p3362_p5)
}
  0x2e   :  { %37 = dma.hbm_to_vmem [thread:$0]  %s3706_s0, 1024, %s35_s1, [#allocation3]  }
  0x2f   :  { %s3506_s23 = smov [#allocation7]  }
  0x30   :  { %s53_s24 = sshll.u32 %s3506_s23, 4  ;;  %s54_s24 = int_to_ptr.vmem [resolvable:$true] %s53_s24 }
  0x31   :  { %s3374_s25 = scalar_lea.vmem %s54_s24, 16384  ;;  %p3379_p7 = scmp.lt.s32.totalorder %s54_s24, %s54_s24 }
  0x32   :  { %p3375_p6 = scmp.ne.s32.totalorder %s54_s24, %s3374_s25  ;;  %p3380_p8 = scmp.lt.s32.totalorder %s3374_s25, %s3374_s25 }
  0x34   :  { %p3381_p9 = por %p3380_p8, %p3379_p7 }
  0x36   :  { %p3382_p10 = pnand %p3381_p9, %p3375_p6 }
  0x38   :  { %3385 = shalt.err (!%p3382_p10)
}
  0x39   :  { %s3507_s8 = smov 128   ;;  %s3508_s28 = smov 8  }
  0x3a   :  { %59 = dma.hbm_to_vmem [thread:$0]  %s3708_s2, 16384, %s54_s24, [#allocation6], %s3507_s8, %s3507_s8, %s3508_s28  }
  0x3b   :  { %s3509_s16 = smov [#allocation10]   ;;  %s3510_s0 = smov [#allocation13]  }
  0x3c   :  { %s81_s17 = sshll.u32 %s3509_s16, 4  ;;  %s109_s1 = sshll.u32 %s3510_s0, 4  ;;  %s82_s17 = int_to_ptr.vmem [resolvable:$true] %s81_s17  ;;  %s110_s1 = int_to_ptr.vmem [resolvable:$true] %s109_s1 }
  0x3d   :  { %s3394_s18 = scalar_lea.vmem %s82_s17, 1024  ;;  %p3399_p12 = scmp.lt.s32.totalorder %s82_s17, %s82_s17 }
  0x3e   :  { %p3395_p11 = scmp.ne.s32.totalorder %s82_s17, %s3394_s18  ;;  %p3400_p13 = scmp.lt.s32.totalorder %s3394_s18, %s3394_s18 }
  0x40   :  { %p3401_p0 = por %p3400_p13, %p3399_p12 }
  0x42   :  { %p3402_p1 = pnand %p3401_p0, %p3395_p11 }
  0x44   :  { %3405 = shalt.err (!%p3402_p1)
}
  0x45   :  { %87 = dma.hbm_to_vmem [thread:$0]  %s3712_s6, 1024, %s82_s17, [#allocation9], %s3502_s26, %s3502_s26, %s3503_s27  }
  0x46   :  { %s3414_s2 = scalar_lea.vmem %s110_s1, 2048  ;;  %p3419_p3 = scmp.lt.s32.totalorder %s110_s1, %s110_s1 }
  0x47   :  { %p3415_p2 = scmp.ne.s32.totalorder %s110_s1, %s3414_s2  ;;  %p3420_p4 = scmp.lt.s32.totalorder %s3414_s2, %s3414_s2 }
  0x49   :  { %p3421_p5 = por %p3420_p4, %p3419_p3 }
  0x4b   :  { %p3422_p6 = pnand %p3421_p5, %p3415_p2 }
  0x4d   :  { %3425 = shalt.err (!%p3422_p6)
}
  0x4e   :  { %115 = dma.hbm_to_vmem [thread:$0]  %s3716_s10, 2048, %s110_s1, [#allocation12], %s3507_s8, %s3507_s8, %s3508_s28  }
  0x4f   :  { %s3511_s22 = smov [#allocation14]  }
  0x50   :  { %s123_s23 = sshll.u32 %s3511_s22, 4  ;;  %s124_s23 = int_to_ptr.vmem [resolvable:$true] %s123_s23 }
  0x51   :  { %s3434_s24 = scalar_lea.vmem %s124_s23, 16384  ;;  %p3439_p8 = scmp.lt.s32.totalorder %s124_s23, %s124_s23 }
  0x52   :  { %p3435_p7 = scmp.ne.s32.totalorder %s124_s23, %s3434_s24  ;;  %p3440_p9 = scmp.lt.s32.totalorder %s3434_s24, %s3434_s24 }
  0x54   :  { %p3441_p10 = por %p3440_p9, %p3439_p8 }
  0x56   :  { %p3442_p11 = pnand %p3441_p10, %p3435_p7 }
  0x58   :  { %3445 = shalt.err (!%p3442_p11)
}
  0x59   :  { %s3512_s6 = smov 512   ;;  %s3513_s26 = smov 32  }
  0x5a   :  { %129 = dma.hbm_to_vmem [thread:$0]  %s3718_s12, 16384, %s124_s23, [#allocation15], %s3512_s6, %s3512_s6, %s3513_s26  }
  0x5b   :  { %3486 = dma.done.wait [#allocation3], 1024  }
  0x5c   :  { %3487 = vsyncadd [#allocation3], 4294966272 }
  0x5d   :  { %3488 = dma.done.wait [#allocation6], 16512  }
  0x5e   :  { %3489 = vsyncadd [#allocation6], 4294950784 }
  0x5f   :  { %3490 = dma.done.wait [#allocation9], 3072  }
  0x60   :  { %3491 = vsyncadd [#allocation9], 4294964224 }
  0x61   :  { %3492 = dma.done.wait [#allocation12], 2304  }
  0x62   :  { %3493 = vsyncadd [#allocation12], 4294964992 }
  0x63   :  { %3494 = dma.done.wait [#allocation15], 16384  }
  0x64   :  { %3495 = vsyncadd [#allocation15], 4294950912  ;;  %v3042_v0 = vld [vmem:[#allocation7 + $0x74] ss:$8 sps:$4 sm:$0xff]   ;;  %v3046_v2 = vld [vmem:[#allocation7 + $0x70] ss:$8 sps:$4 sm:$0xff]  }
  0x65   :  { %v3044_v1 = vld [vmem:[#allocation7 + $0x174] ss:$8 sps:$4 sm:$0xff]   ;;  %953 = vmatprep.subr.bf16.mxu0 %v3042_v0  ;;  %v3047_v3 = vld [vmem:[#allocation7 + $0x170] ss:$8 sps:$4 sm:$0xff]   ;;  %v3048_v4 = vld [vmem:[#allocation7 + $0x64] ss:$8 sps:$4 sm:$0xff]  }
  0x66   :  { %994 = vmatprep.subr.bf16.mxu1 %v3044_v1  ;;  %954 = vmatpush1.bf16.msra.mxu0 %v3046_v2  ;;  %v3050_v5 = vld [vmem:[#allocation7 + $0x164] ss:$8 sps:$4 sm:$0xff]   ;;  %v3052_v6 = vld [vmem:[#allocation7 + $0x60] ss:$8 sps:$4 sm:$0xff]   ;;  %v3054_v8 = vld [vmem:[#allocation7 + $0x54] ss:$8 sps:$4 sm:$0xff]  }
  0x67   :  { %995 = vmatpush1.bf16.msra.mxu1 %v3047_v3  ;;  %955 = vmatprep.subr.bf16.mxu0 %v3048_v4  ;;  %v3053_v7 = vld [vmem:[#allocation7 + $0x160] ss:$8 sps:$4 sm:$0xff]   ;;  %v3056_v9 = vld [vmem:[#allocation7 + $0x154] ss:$8 sps:$4 sm:$0xff]   ;;  %v3058_v10 = vld [vmem:[#allocation7 + $0x50] ss:$8 sps:$4 sm:$0xff]  }
  0x68   :  { %996 = vmatprep.subr.bf16.mxu1 %v3050_v5  ;;  %v3059_v11 = vld [vmem:[#allocation7 + $0x150] ss:$8 sps:$4 sm:$0xff]   ;;  %v3060_v12 = vld [vmem:[#allocation7 + $0x44] ss:$8 sps:$4 sm:$0xff]   ;;  %v3064_v14 = vld [vmem:[#allocation7 + $0x40] ss:$8 sps:$4 sm:$0xff]  }
  0x69   :  { %v3062_v13 = vld [vmem:[#allocation7 + $0x144] ss:$8 sps:$4 sm:$0xff]   ;;  %v3065_v15 = vld [vmem:[#allocation7 + $0x140] ss:$8 sps:$4 sm:$0xff]   ;;  %v3066_v16 = vld [vmem:[#allocation7 + $0x34] ss:$8 sps:$4 sm:$0xff]  }
  0x6a   :  { %956 = vmatpush1.bf16.msra.mxu0 %v3052_v6  ;;  %v3068_v17 = vld [vmem:[#allocation7 + $0x134] ss:$8 sps:$4 sm:$0xff]   ;;  %v3070_v18 = vld [vmem:[#allocation7 + $0x30] ss:$8 sps:$4 sm:$0xff]   ;;  %v3072_v20 = vld [vmem:[#allocation7 + $0x24] ss:$8 sps:$4 sm:$0xff]  }
  0x6b   :  { %997 = vmatpush1.bf16.msra.mxu1 %v3053_v7  ;;  %957 = vmatprep.subr.bf16.mxu0 %v3054_v8  ;;  %v3071_v19 = vld [vmem:[#allocation7 + $0x130] ss:$8 sps:$4 sm:$0xff]   ;;  %v3074_v21 = vld [vmem:[#allocation7 + $0x124] ss:$8 sps:$4 sm:$0xff]   ;;  %v3076_v22 = vld [vmem:[#allocation7 + $0x20] ss:$8 sps:$4 sm:$0xff]  }
  0x6c   :  { %998 = vmatprep.subr.bf16.mxu1 %v3056_v9  ;;  %v3077_v23 = vld [vmem:[#allocation7 + $0x120] ss:$8 sps:$4 sm:$0xff]   ;;  %v3078_v24 = vld [vmem:[#allocation7 + $0x14] ss:$8 sps:$4 sm:$0xff]   ;;  %v3082_v26 = vld [vmem:[#allocation7 + $0x10] ss:$8 sps:$4 sm:$0xff]  }
  0x6d   :  { %v3080_v25 = vld [vmem:[#allocation7 + $0x114] ss:$8 sps:$4 sm:$0xff]   ;;  %v3083_v27 = vld [vmem:[#allocation7 + $0x110] ss:$8 sps:$4 sm:$0xff]   ;;  %v3084_v28 = vld [vmem:[#allocation7 + $0x4] ss:$8 sps:$4 sm:$0xff]  }
  0x6e   :  { %958 = vmatpush1.bf16.msra.mxu0 %v3058_v10  ;;  %v3086_v29 = vld [vmem:[#allocation7 + $0x104] ss:$8 sps:$4 sm:$0xff]   ;;  %v3088_v30 = vld [vmem:[#allocation7] ss:$8 sps:$4 sm:$0xff]   ;;  %v3090_v32 = vld [vmem:[#allocation7 + $0xf4] ss:$8 sps:$4 sm:$0xff]  }
  0x6f   :  { %999 = vmatpush1.bf16.msra.mxu1 %v3059_v11  ;;  %959 = vmatprep.subr.bf16.mxu0 %v3060_v12  ;;  %v3089_v31 = vld [vmem:[#allocation7 + $0x100] ss:$8 sps:$4 sm:$0xff]   ;;  %v3092_v33 = vld [vmem:[#allocation7 + $0x1f4] ss:$8 sps:$4 sm:$0xff]   ;;  %v3094_v34 = vld [vmem:[#allocation7 + $0xf0] ss:$8 sps:$4 sm:$0xff]  }
  0x70   :  { %1000 = vmatprep.subr.bf16.mxu1 %v3062_v13  ;;  %v3095_v35 = vld [vmem:[#allocation7 + $0x1f0] ss:$8 sps:$4 sm:$0xff]   ;;  %v3096_v36 = vld [vmem:[#allocation7 + $0xe4] ss:$8 sps:$4 sm:$0xff]   ;;  %v3100_v38 = vld [vmem:[#allocation7 + $0xe0] ss:$8 sps:$4 sm:$0xff]  }
  0x71   :  { %v3098_v37 = vld [vmem:[#allocation7 + $0x1e4] ss:$8 sps:$4 sm:$0xff]   ;;  %v3101_v39 = vld [vmem:[#allocation7 + $0x1e0] ss:$8 sps:$4 sm:$0xff]   ;;  %v3102_v40 = vld [vmem:[#allocation7 + $0xd4] ss:$8 sps:$4 sm:$0xff]  }
  0x72   :  { %960 = vmatpush1.bf16.msra.mxu0 %v3064_v14  ;;  %v3104_v41 = vld [vmem:[#allocation7 + $0x1d4] ss:$8 sps:$4 sm:$0xff]   ;;  %v3106_v42 = vld [vmem:[#allocation7 + $0xd0] ss:$8 sps:$4 sm:$0xff]   ;;  %v3108_v44 = vld [vmem:[#allocation7 + $0xc4] ss:$8 sps:$4 sm:$0xff]  }
  0x73   :  { %1001 = vmatpush1.bf16.msra.mxu1 %v3065_v15  ;;  %961 = vmatprep.subr.bf16.mxu0 %v3066_v16  ;;  %v3107_v43 = vld [vmem:[#allocation7 + $0x1d0] ss:$8 sps:$4 sm:$0xff]   ;;  %v3110_v45 = vld [vmem:[#allocation7 + $0x1c4] ss:$8 sps:$4 sm:$0xff]   ;;  %v3112_v47 = vld [vmem:[#allocation7 + $0xc0] ss:$8 sps:$4 sm:$0xff]  }
  0x74   :  { %1002 = vmatprep.subr.bf16.mxu1 %v3068_v17  ;;  %v158_v46 = vld [vmem:[#allocation2 + $0x8] sm:$0xff]  ;;  %v160_v50 = vld [vmem:[#allocation2 + $0x18] sm:$0xff]  ;;  %v157_v4 = vld [vmem:[#allocation2] sm:$0xff]  ;;  %vm3515_vm0 = vmmov 0   ;;  %vm1444_vm1 = vcmask 261120  }
  0x75   :  { %v3113_v48 = vld [vmem:[#allocation7 + $0x1c0] ss:$8 sps:$4 sm:$0xff]   ;;  %v166_v49 = vpack.c.bf16 %v158_v46, %v158_v46  ;;  %v3114_v51 = vld [vmem:[#allocation7 + $0xb4] ss:$8 sps:$4 sm:$0xff]   ;;  %v168_v52 = vpack.c.bf16 %v160_v50, %v160_v50  ;;  %v3118_v54 = vld [vmem:[#allocation7 + $0xb0] ss:$8 sps:$4 sm:$0xff]   ;;  %v165_v8 = vpack.c.bf16 %v157_v4, %v157_v4 }
  0x76   :  { %962 = vmatpush1.bf16.msra.mxu0 %v3070_v18  ;;  %v3116_v53 = vld [vmem:[#allocation7 + $0x1b4] ss:$8 sps:$4 sm:$0xff]   ;;  %v3119_v55 = vld [vmem:[#allocation7 + $0x1b0] ss:$8 sps:$4 sm:$0xff]   ;;  %v3120_v56 = vld [vmem:[#allocation7 + $0xa4] ss:$8 sps:$4 sm:$0xff]  }
  0x77   :  { %1003 = vmatpush1.bf16.msra.mxu1 %v3071_v19  ;;  %963 = vmatprep.subr.bf16.mxu0 %v3072_v20  ;;  %v3122_v57 = vld [vmem:[#allocation7 + $0x1a4] ss:$8 sps:$4 sm:$0xff]   ;;  %v3124_v58 = vld [vmem:[#allocation7 + $0xa0] ss:$8 sps:$4 sm:$0xff]   ;;  %v3126_v60 = vld [vmem:[#allocation7 + $0x94] ss:$8 sps:$4 sm:$0xff]  }
  0x78   :  { %1004 = vmatprep.subr.bf16.mxu1 %v3074_v21  ;;  %985 = vmatprep.mubr.bf16.mxu0 %v166_v49  ;;  %v3125_v59 = vld [vmem:[#allocation7 + $0x1a0] ss:$8 sps:$4 sm:$0xff]   ;;  %v3128_v61 = vld [vmem:[#allocation7 + $0x194] ss:$8 sps:$4 sm:$0xff]   ;;  %v3130_v62 = vld [vmem:[#allocation7 + $0x90] ss:$8 sps:$4 sm:$0xff]  }
  0x79   :  { %1026 = vmatprep.mubr.bf16.mxu1 %v168_v52  ;;  %v3131_v63 = vld [vmem:[#allocation7 + $0x190] ss:$8 sps:$4 sm:$0xff]   ;;  %v3132_v0 = vld [vmem:[#allocation7 + $0x84] ss:$8 sps:$4 sm:$0xff]   ;;  %v3136_v2 = vld [vmem:[#allocation7 + $0x80] ss:$8 sps:$4 sm:$0xff]  }
  0x7a   :  { %964 = vmatpush1.bf16.msra.mxu0 %v3076_v22  ;;  %v3134_v1 = vld [vmem:[#allocation7 + $0x184] ss:$8 sps:$4 sm:$0xff]   ;;  %v3137_v3 = vld [vmem:[#allocation7 + $0x180] ss:$8 sps:$4 sm:$0xff]   ;;  %v3140_v6 = vld [vmem:[#allocation7 + $0x274] ss:$8 sps:$4 sm:$0xff]  }
  0x7b   :  { %1005 = vmatpush1.bf16.msra.mxu1 %v3077_v23  ;;  %965 = vmatprep.subr.bf16.mxu0 %v3078_v24  ;;  %v159_v5 = vld [vmem:[#allocation2 + $0x10] sm:$0xff]  ;;  %v3143_v7 = vld [vmem:[#allocation7 + $0x374] ss:$8 sps:$4 sm:$0xff]   ;;  %v3138_v10 = vld [vmem:[#allocation7 + $0x270] ss:$8 sps:$4 sm:$0xff]  }
  0x7c   :  { %1006 = vmatprep.subr.bf16.mxu1 %v3080_v25  ;;  %v167_v9 = vpack.c.bf16 %v159_v5, %v159_v5  ;;  %v3141_v11 = vld [vmem:[#allocation7 + $0x370] ss:$8 sps:$4 sm:$0xff]   ;;  %v3146_v12 = vld [vmem:[#allocation7 + $0x264] ss:$8 sps:$4 sm:$0xff]   ;;  %v3144_v14 = vld [vmem:[#allocation7 + $0x260] ss:$8 sps:$4 sm:$0xff]  }
  0x7d   :  { %v3149_v13 = vld [vmem:[#allocation7 + $0x364] ss:$8 sps:$4 sm:$0xff]   ;;  %v3147_v15 = vld [vmem:[#allocation7 + $0x360] ss:$8 sps:$4 sm:$0xff]   ;;  %v3152_v16 = vld [vmem:[#allocation7 + $0x254] ss:$8 sps:$4 sm:$0xff]  }
  0x7e   :  { %966 = vmatpush1.bf16.msra.mxu0 %v3082_v26  ;;  %v3155_v17 = vld [vmem:[#allocation7 + $0x354] ss:$8 sps:$4 sm:$0xff]   ;;  %v3150_v18 = vld [vmem:[#allocation7 + $0x250] ss:$8 sps:$4 sm:$0xff]   ;;  %v3158_v20 = vld [vmem:[#allocation7 + $0x244] ss:$8 sps:$4 sm:$0xff]  }
  0x7f   :  { %1007 = vmatpush1.bf16.msra.mxu1 %v3083_v27  ;;  %967 = vmatprep.subr.bf16.mxu0 %v3084_v28  ;;  %v3153_v19 = vld [vmem:[#allocation7 + $0x350] ss:$8 sps:$4 sm:$0xff]   ;;  %v3161_v21 = vld [vmem:[#allocation7 + $0x344] ss:$8 sps:$4 sm:$0xff]   ;;  %v3156_v22 = vld [vmem:[#allocation7 + $0x240] ss:$8 sps:$4 sm:$0xff]  }
  0x80   :  { %1008 = vmatprep.subr.bf16.mxu1 %v3086_v29  ;;  %v3159_v23 = vld [vmem:[#allocation7 + $0x340] ss:$8 sps:$4 sm:$0xff]   ;;  %v3164_v24 = vld [vmem:[#allocation7 + $0x234] ss:$8 sps:$4 sm:$0xff]   ;;  %v3162_v26 = vld [vmem:[#allocation7 + $0x230] ss:$8 sps:$4 sm:$0xff]  }
  0x81   :  { %v3167_v25 = vld [vmem:[#allocation7 + $0x334] ss:$8 sps:$4 sm:$0xff]   ;;  %v3165_v27 = vld [vmem:[#allocation7 + $0x330] ss:$8 sps:$4 sm:$0xff]   ;;  %v3170_v28 = vld [vmem:[#allocation7 + $0x224] ss:$8 sps:$4 sm:$0xff]  }
  0x82   :  { %968 = vmatpush1.bf16.msra.mxu0 %v3088_v30  ;;  %v3173_v29 = vld [vmem:[#allocation7 + $0x324] ss:$8 sps:$4 sm:$0xff]   ;;  %v3168_v30 = vld [vmem:[#allocation7 + $0x220] ss:$8 sps:$4 sm:$0xff]   ;;  %v3186_v46 = vld [vmem:[#allocation7 + $0x2f0] ss:$8 sps:$4 sm:$0xff]  }
  0x83   :  { %1009 = vmatpush1.bf16.msra.mxu1 %v3089_v31  ;;  %969 = vmatprep.subr.bf16.mxu0 %v3090_v32  ;;  %v3171_v31 = vld [vmem:[#allocation7 + $0x320] ss:$8 sps:$4 sm:$0xff]   ;;  %v3176_v32 = vld [vmem:[#allocation7 + $0x214] ss:$8 sps:$4 sm:$0xff]   ;;  %v3197_v49 = vld [vmem:[#allocation7 + $0x3e4] ss:$8 sps:$4 sm:$0xff]  }
  0x84   :  { %1010 = vmatprep.subr.bf16.mxu1 %v3092_v33  ;;  %v3179_v33 = vld [vmem:[#allocation7 + $0x314] ss:$8 sps:$4 sm:$0xff]   ;;  %v3192_v50 = vld [vmem:[#allocation7 + $0x2e0] ss:$8 sps:$4 sm:$0xff]  }
  0x85   :  { %v3200_v52 = vld [vmem:[#allocation7 + $0x2d4] ss:$8 sps:$4 sm:$0xff]  }
  0x86   :  { %970 = vmatpush2.bf16.msra.mxu0 %v3094_v34  ;;  %v3174_v34 = vld [vmem:[#allocation7 + $0x210] ss:$8 sps:$4 sm:$0xff]   ;;  %v3224_v4 = vld [vmem:[#allocation7 + $0x294] ss:$8 sps:$4 sm:$0xff]  }
  0x87   :  { %1011 = vmatpush2.bf16.msra.mxu1 %v3095_v35  ;;  %971 = vmatprep.subr.bf16.mxu0 %v3096_v36  ;;  %v162_v35 = vld [vmem:[#allocation2 + $0x28] sm:$0xff]  ;;  %v3177_v36 = vld [vmem:[#allocation7 + $0x310] ss:$8 sps:$4 sm:$0xff]   ;;  %v3227_v5 = vld [vmem:[#allocation7 + $0x394] ss:$8 sps:$4 sm:$0xff]  }
  0x88   :  { %1012 = vmatprep.subr.bf16.mxu1 %v3098_v37  ;;  %v3182_v37 = vld [vmem:[#allocation7 + $0x204] ss:$8 sps:$4 sm:$0xff]  }
  0x8a   :  { %972 = vmatpush2.bf16.msra.mxu0 %v3100_v38  ;;  %v170_v38 = vpack.c.bf16 %v162_v35, %v162_v35  ;;  %v3252_v35 = vld [vmem:[#allocation10 + $0x28] sm:$0xff]  }
  0x8b   :  { %1013 = vmatpush2.bf16.msra.mxu1 %v3101_v39  ;;  %973 = vmatprep.subr.bf16.mxu0 %v3102_v40  ;;  %v164_v39 = vld [vmem:[#allocation2 + $0x38] sm:$0xff]  ;;  %v3185_v40 = vld [vmem:[#allocation7 + $0x304] ss:$8 sps:$4 sm:$0xff]  }
  0x8c   :  { %1014 = vmatprep.subr.bf16.mxu1 %v3104_v41  ;;  %v172_v41 = vpack.c.bf16 %v164_v39, %v164_v39 }
  0x8e   :  { %974 = vmatpush2.bf16.msra.mxu0 %v3106_v42  ;;  %v3180_v42 = vld [vmem:[#allocation7 + $0x200] ss:$8 sps:$4 sm:$0xff]  }
  0x8f   :  { %1015 = vmatpush2.bf16.msra.mxu1 %v3107_v43  ;;  %975 = vmatprep.subr.bf16.mxu0 %v3108_v44  ;;  %v3183_v43 = vld [vmem:[#allocation7 + $0x300] ss:$8 sps:$4 sm:$0xff]   ;;  %v3188_v44 = vld [vmem:[#allocation7 + $0x2f4] ss:$8 sps:$4 sm:$0xff]  }
  0x90   :  { %1016 = vmatprep.subr.bf16.mxu1 %v3110_v45  ;;  %v3191_v45 = vld [vmem:[#allocation7 + $0x3f4] ss:$8 sps:$4 sm:$0xff]  }
  0x92   :  { %976 = vmatpush2.bf16.msra.mxu0 %v3112_v47  ;;  %v3189_v47 = vld [vmem:[#allocation7 + $0x3f0] ss:$8 sps:$4 sm:$0xff]  }
  0x93   :  { %1017 = vmatpush2.bf16.msra.mxu1 %v3113_v48  ;;  %977 = vmatprep.subr.bf16.mxu0 %v3114_v51  ;;  %v3194_v48 = vld [vmem:[#allocation7 + $0x2e4] ss:$8 sps:$4 sm:$0xff]   ;;  %v3195_v51 = vld [vmem:[#allocation7 + $0x3e0] ss:$8 sps:$4 sm:$0xff]  }
  0x94   :  { %1018 = vmatprep.subr.bf16.mxu1 %v3116_v53  ;;  %v3203_v53 = vld [vmem:[#allocation7 + $0x3d4] ss:$8 sps:$4 sm:$0xff]  }
  0x96   :  { %978 = vmatpush2.bf16.msra.mxu0 %v3118_v54  ;;  %v3198_v54 = vld [vmem:[#allocation7 + $0x2d0] ss:$8 sps:$4 sm:$0xff]  }
  0x97   :  { %1019 = vmatpush2.bf16.msra.mxu1 %v3119_v55  ;;  %979 = vmatprep.subr.bf16.mxu0 %v3120_v56  ;;  %v3201_v55 = vld [vmem:[#allocation7 + $0x3d0] ss:$8 sps:$4 sm:$0xff]   ;;  %v3206_v56 = vld [vmem:[#allocation7 + $0x2c4] ss:$8 sps:$4 sm:$0xff]  }
  0x98   :  { %1020 = vmatprep.subr.bf16.mxu1 %v3122_v57  ;;  %v3209_v57 = vld [vmem:[#allocation7 + $0x3c4] ss:$8 sps:$4 sm:$0xff]  }
  0x9a   :  { %980 = vmatpush2.bf16.msra.mxu0 %v3124_v58  ;;  %v3204_v58 = vld [vmem:[#allocation7 + $0x2c0] ss:$8 sps:$4 sm:$0xff]  }
  0x9b   :  { %1021 = vmatpush2.bf16.msra.mxu1 %v3125_v59  ;;  %981 = vmatprep.subr.bf16.mxu0 %v3126_v60  ;;  %v3207_v59 = vld [vmem:[#allocation7 + $0x3c0] ss:$8 sps:$4 sm:$0xff]   ;;  %v3212_v60 = vld [vmem:[#allocation7 + $0x2b4] ss:$8 sps:$4 sm:$0xff]  }
  0x9c   :  { %1022 = vmatprep.subr.bf16.mxu1 %v3128_v61  ;;  %v3215_v61 = vld [vmem:[#allocation7 + $0x3b4] ss:$8 sps:$4 sm:$0xff]  }
  0x9e   :  { %982 = vmatpush2.bf16.msra.mxu0 %v3130_v62  ;;  %v3210_v62 = vld [vmem:[#allocation7 + $0x2b0] ss:$8 sps:$4 sm:$0xff]  }
  0x9f   :  { %1023 = vmatpush2.bf16.msra.mxu1 %v3131_v63  ;;  %983 = vmatprep.subr.bf16.mxu0 %v3132_v0  ;;  %v3213_v63 = vld [vmem:[#allocation7 + $0x3b0] ss:$8 sps:$4 sm:$0xff]   ;;  %v3218_v0 = vld [vmem:[#allocation7 + $0x2a4] ss:$8 sps:$4 sm:$0xff]  }
  0xa0   :  { %1024 = vmatprep.subr.bf16.mxu1 %v3134_v1  ;;  %v3221_v1 = vld [vmem:[#allocation7 + $0x3a4] ss:$8 sps:$4 sm:$0xff]  }
  0xa2   :  { %984 = vmatpush2.bf16.msra.mxu0 %v3136_v2  ;;  %v3216_v2 = vld [vmem:[#allocation7 + $0x2a0] ss:$8 sps:$4 sm:$0xff]  }
  0xa3   :  { %1025 = vmatpush2.bf16.msra.mxu1 %v3137_v3  ;;  %1035 = vmatprep.subr.bf16.mxu0 %v3140_v6  ;;  %v3219_v3 = vld [vmem:[#allocation7 + $0x3a0] ss:$8 sps:$4 sm:$0xff]   ;;  %v3222_v6 = vld [vmem:[#allocation7 + $0x290] ss:$8 sps:$4 sm:$0xff]  }
  0xa4   :  { %1076 = vmatprep.subr.bf16.mxu1 %v3143_v7  ;;  %v3225_v7 = vld [vmem:[#allocation7 + $0x390] ss:$8 sps:$4 sm:$0xff]  }
  0xa5   :  { %986 = vmatmul.mubr.bf16.vlgmr.msra.gmra.mxu0 %v165_v8  ;;  %v3230_v8 = vld [vmem:[#allocation7 + $0x284] ss:$8 sps:$4 sm:$0xff]  }
  0xa6   :  { %1027 = vmatmul.mubr.bf16.vlgmr.msra.gmra.mxu1 %v167_v9  ;;  %1036 = vmatpush1.bf16.msra.mxu0 %v3138_v10  ;;  %v3233_v9 = vld [vmem:[#allocation7 + $0x384] ss:$8 sps:$4 sm:$0xff]   ;;  %v3228_v10 = vld [vmem:[#allocation7 + $0x280] ss:$8 sps:$4 sm:$0xff]  }
  0xa7   :  { %1077 = vmatpush1.bf16.msra.mxu1 %v3141_v11  ;;  %1037 = vmatprep.subr.bf16.mxu0 %v3146_v12  ;;  %v3231_v11 = vld [vmem:[#allocation7 + $0x380] ss:$8 sps:$4 sm:$0xff]   ;;  %v161_v12 = vld [vmem:[#allocation2 + $0x20] sm:$0xff] }
  0xa8   :  { %1078 = vmatprep.subr.bf16.mxu1 %v3149_v13  ;;  %1067 = vmatprep.mubr.bf16.mxu0 %v170_v38  ;;  %v163_v13 = vld [vmem:[#allocation2 + $0x30] sm:$0xff] }
  0xa9   :  { %1108 = vmatprep.mubr.bf16.mxu1 %v172_v41 }
  0xaa   :  { %1038 = vmatpush1.bf16.msra.mxu0 %v3144_v14  ;;  %v169_v14 = vpack.c.bf16 %v161_v12, %v161_v12 }
  0xab   :  { %1079 = vmatpush1.bf16.msra.mxu1 %v3147_v15  ;;  %1039 = vmatprep.subr.bf16.mxu0 %v3152_v16  ;;  %v171_v15 = vpack.c.bf16 %v163_v13, %v163_v13  ;;  %v3234_v16 = vld [vmem:[#allocation8 + $0x78] sm:$0xff]  }
  0xac   :  { %1080 = vmatprep.subr.bf16.mxu1 %v3155_v17  ;;  %v3235_v17 = vld [vmem:[#allocation8 + $0x38] sm:$0xff]  }
  0xad   :  { %v2786_v13 = vld [vmem:[%s3711_s5] ss:$0 sm:$0xff]  ;;  %s3516_s5 = smov 96  }
  0xae   :  { %1040 = vmatpush1.bf16.msra.mxu0 %v3150_v18  ;;  %v3236_v18 = vld [vmem:[#allocation8 + $0x70] sm:$0xff]  }
  0xaf   :  { %1081 = vmatpush1.bf16.msra.mxu1 %v3153_v19  ;;  %1041 = vmatprep.subr.bf16.mxu0 %v3158_v20  ;;  %v3237_v19 = vld [vmem:[#allocation8 + $0x30] sm:$0xff]   ;;  %v3238_v20 = vld [vmem:[#allocation8 + $0x68] sm:$0xff]  }
  0xb0   :  { %1082 = vmatprep.subr.bf16.mxu1 %v3161_v21  ;;  %v3239_v21 = vld [vmem:[#allocation8 + $0x28] sm:$0xff]  }
  0xb2   :  { %1042 = vmatpush1.bf16.msra.mxu0 %v3156_v22  ;;  %v3240_v22 = vld [vmem:[#allocation8 + $0x60] sm:$0xff]  }
  0xb3   :  { %1083 = vmatpush1.bf16.msra.mxu1 %v3159_v23  ;;  %1043 = vmatprep.subr.bf16.mxu0 %v3164_v24  ;;  %v3241_v23 = vld [vmem:[#allocation8 + $0x20] sm:$0xff]   ;;  %v3242_v24 = vld [vmem:[#allocation8 + $0x58] sm:$0xff]  }
  0xb4   :  { %1084 = vmatprep.subr.bf16.mxu1 %v3167_v25  ;;  %v3243_v25 = vld [vmem:[#allocation8 + $0x18] sm:$0xff]  }
  0xb6   :  { %1044 = vmatpush1.bf16.msra.mxu0 %v3162_v26  ;;  %v3244_v26 = vld [vmem:[#allocation8 + $0x50] sm:$0xff]  }
  0xb7   :  { %1085 = vmatpush1.bf16.msra.mxu1 %v3165_v27  ;;  %1045 = vmatprep.subr.bf16.mxu0 %v3170_v28  ;;  %v3245_v27 = vld [vmem:[#allocation8 + $0x10] sm:$0xff]   ;;  %v3246_v28 = vld [vmem:[#allocation8 + $0x48] sm:$0xff]  }
  0xb8   :  { %1086 = vmatprep.subr.bf16.mxu1 %v3173_v29  ;;  %v3247_v29 = vld [vmem:[#allocation8 + $0x8] sm:$0xff]  }
  0xba   :  { %1046 = vmatpush1.bf16.msra.mxu0 %v3168_v30  ;;  %v3248_v30 = vld [vmem:[#allocation8 + $0x40] sm:$0xff]  }
  0xbb   :  { %1087 = vmatpush1.bf16.msra.mxu1 %v3171_v31  ;;  %1047 = vmatprep.subr.bf16.mxu0 %v3176_v32  ;;  %v3249_v31 = vld [vmem:[#allocation8] sm:$0xff]   ;;  %v3250_v32 = vld [vmem:[#allocation10 + $0x38] sm:$0xff]  }
  0xbc   :  { %1088 = vmatprep.subr.bf16.mxu1 %v3179_v33  ;;  %v3514_v33 = vmov 0.0  }
  0xbe   :  { %1048 = vmatpush1.bf16.msra.mxu0 %v3174_v34  ;;  %v3251_v34 = vld [vmem:[#allocation10 + $0x30] sm:$0xff]  }
  0xbf   :  { %1089 = vmatpush1.bf16.msra.mxu1 %v3177_v36  ;;  %1049 = vmatprep.subr.bf16.mxu0 %v3182_v37  ;;  %v3253_v36 = vld [vmem:[#allocation10 + $0x20] sm:$0xff]   ;;  %v3254_v37 = vld [vmem:[#allocation10 + $0x18] sm:$0xff]  }
  0xc0   :  { %1090 = vmatprep.subr.bf16.mxu1 %v3185_v40 }
  0xc2   :  { %1050 = vmatpush1.bf16.msra.mxu0 %v3180_v42 }
  0xc3   :  { %1091 = vmatpush1.bf16.msra.mxu1 %v3183_v43  ;;  %1051 = vmatprep.subr.bf16.mxu0 %v3188_v44 }
  0xc4   :  { %1092 = vmatprep.subr.bf16.mxu1 %v3191_v45 }
  0xc6   :  { %1052 = vmatpush2.bf16.msra.mxu0 %v3186_v46  ;;  %v303_v46 = vlaneseq }
  0xc7   :  { %1093 = vmatpush2.bf16.msra.mxu1 %v3189_v47  ;;  %1053 = vmatprep.subr.bf16.mxu0 %v3194_v48 }
  0xc8   :  { %1094 = vmatprep.subr.bf16.mxu1 %v3197_v49  ;;  %v3640_v47 = vshrl.u32 %v303_v46, 7  ;;  %v301_v49 = vld [vmem:[%s3709_s3] sm:$0x3] }
  0xc9   :  { %v1413_v46 = vld [vmem:[#allocation5] sm:$0xff] }
  0xca   :  { %1054 = vmatpush2.bf16.msra.mxu0 %v3192_v50  ;;  %v3643_v48 = vsub.s32 0, %v3640_v47  ;;  %v3649_v50 = vsub.s32 1, %v3640_v47 }
  0xcb   :  { %1095 = vmatpush2.bf16.msra.mxu1 %v3195_v51  ;;  %1055 = vmatprep.subr.bf16.mxu0 %v3200_v52 }
  0xcc   :  { %1096 = vmatprep.subr.bf16.mxu1 %v3203_v53  ;;  %v306_v51 = vrot.slane %v301_v49, %v3643_v48  ;;  %v310_v52 = vrot.slane %v301_v49, %v3649_v50 }
  0xce   :  { %1056 = vmatpush2.bf16.msra.mxu0 %v3198_v54 }
  0xcf   :  { %1097 = vmatpush2.bf16.msra.mxu1 %v3201_v55  ;;  %1057 = vmatprep.subr.bf16.mxu0 %v3206_v56 }
  0xd0   :  { %1098 = vmatprep.subr.bf16.mxu1 %v3209_v57 }
  0xd2   :  { %1058 = vmatpush2.bf16.msra.mxu0 %v3204_v58 }
  0xd3   :  { %1099 = vmatpush2.bf16.msra.mxu1 %v3207_v59  ;;  %1059 = vmatprep.subr.bf16.mxu0 %v3212_v60 }
  0xd4   :  { %1100 = vmatprep.subr.bf16.mxu1 %v3215_v61 }
  0xd6   :  { %1060 = vmatpush2.bf16.msra.mxu0 %v3210_v62 }
  0xd7   :  { %1101 = vmatpush2.bf16.msra.mxu1 %v3213_v63  ;;  %1061 = vmatprep.subr.bf16.mxu0 %v3218_v0 }
  0xd8   :  { %1102 = vmatprep.subr.bf16.mxu1 %v3221_v1 }
  0xda   :  { %1062 = vmatpush2.bf16.msra.mxu0 %v3216_v2 }
  0xdb   :  { %1103 = vmatpush2.bf16.msra.mxu1 %v3219_v3  ;;  %1063 = vmatprep.subr.bf16.mxu0 %v3224_v4 }
  0xdc   :  { %1104 = vmatprep.subr.bf16.mxu1 %v3227_v5 }
  0xde   :  { %1064 = vmatpush2.bf16.msra.mxu0 %v3222_v6 }
  0xdf   :  { %1105 = vmatpush2.bf16.msra.mxu1 %v3225_v7  ;;  %1065 = vmatprep.subr.bf16.mxu0 %v3230_v8 }
  0xe0   :  { %1106 = vmatprep.subr.bf16.mxu1 %v3233_v9  ;;  %v3255_v9 = vld [vmem:[#allocation10 + $0x10] sm:$0xff]  }
  0xe2   :  { %1066 = vmatpush2.bf16.msra.mxu0 %v3228_v10  ;;  %v3256_v10 = vld [vmem:[#allocation10 + $0x8] sm:$0xff]  }
  0xe3   :  { %1107 = vmatpush2.bf16.msra.mxu1 %v3231_v11  ;;  %2960 = vmatprep.subr.bf16.mxu0 %v3234_v16  ;;  %v3257_v11 = vld [vmem:[#allocation10] sm:$0xff]  }
  0xe4   :  { %2994 = vmatprep.subr.bf16.mxu1 %v3514_v33 }
  0xe5   :  { %1068 = vmatmul.mubr.bf16.vlgmr.msra.gmra.mxu0 %v169_v14 }
  0xe6   :  { %1109 = vmatmul.mubr.bf16.vlgmr.msra.gmra.mxu1 %v171_v15  ;;  %2961 = vmatpush3.bf16.msra.mxu0 %v3235_v17 }
  0xe7   :  { %2962 = vmatprep.subr.bf16.mxu0 %v3236_v18  ;;  %2995 = vmatpush3.bf16.msra.mxu1 %v3250_v32  ;;  %v3262_v32 = vld [vmem:[#allocation13 + $0x74] ss:$8 sps:$4 sm:$0xff]  }
  0xe8   :  { %2996 = vmatprep.subr.bf16.mxu1 %v3514_v33  ;;  %3010 = vmatprep.mubr.msk.bf16.mxu1 %vm3515_vm0, %v3514_v33 }
  0xea   :  { %2963 = vmatpush3.bf16.msra.mxu0 %v3237_v19 }
  0xeb   :  { %2964 = vmatprep.subr.bf16.mxu0 %v3238_v20  ;;  %2997 = vmatpush3.bf16.msra.mxu1 %v3251_v34  ;;  %v3265_v34 = vld [vmem:[#allocation13 + $0x64] ss:$8 sps:$4 sm:$0xff]  }
  0xec   :  { %2998 = vmatprep.subr.bf16.mxu1 %v3514_v33 }
  0xee   :  { %2965 = vmatpush3.bf16.msra.mxu0 %v3239_v21  ;;  %v3258_v21 = vld [vmem:[#allocation11 + $0x8] sm:$0xff]  }
  0xef   :  { %2966 = vmatprep.subr.bf16.mxu0 %v3240_v22  ;;  %2999 = vmatpush3.bf16.msra.mxu1 %v3252_v35  ;;  %v2803_v22 = vld [vmem:[%s3713_s7] ss:$0 sm:$0xff]  ;;  %v3268_v35 = vld [vmem:[#allocation13 + $0x54] ss:$8 sps:$4 sm:$0xff]  }
  0xf0   :  { %3000 = vmatprep.subr.bf16.mxu1 %v3514_v33 }
  0xf2   :  { %2967 = vmatpush3.bf16.msra.mxu0 %v3241_v23 }
  0xf3   :  { %2968 = vmatprep.subr.bf16.mxu0 %v3242_v24  ;;  %3001 = vmatpush3.bf16.msra.mxu1 %v3253_v36 }
  0xf4   :  { %3002 = vmatprep.subr.bf16.mxu1 %v3514_v33 }
  0xf6   :  { %2969 = vmatpush3.bf16.msra.mxu0 %v3243_v25 }
  0xf7   :  { %2970 = vmatprep.subr.bf16.mxu0 %v3244_v26  ;;  %3003 = vmatpush3.bf16.msra.mxu1 %v3254_v37  ;;  %v3266_v37 = vld [vmem:[#allocation13 + $0x50] ss:$8 sps:$4 sm:$0xff]  }
  0xf8   :  { %3004 = vmatprep.subr.bf16.mxu1 %v3514_v33 }
  0xfa   :  { %2971 = vmatpush3.bf16.msra.mxu0 %v3245_v27 }
  0xfb   :  { %2972 = vmatprep.subr.bf16.mxu0 %v3246_v28  ;;  %3005 = vmatpush3.bf16.msra.mxu1 %v3255_v9  ;;  %v1675_v9 = vld [vmem:[#allocation14 + $0x100] sm:$0xff] }
  0xfc   :  { %3006 = vmatprep.subr.bf16.mxu1 %v3514_v33 }
  0xfe   :  { %2973 = vmatpush3.bf16.msra.mxu0 %v3247_v29 }
  0xff   :  { %2974 = vmatprep.subr.bf16.mxu0 %v3248_v30  ;;  %3007 = vmatpush3.bf16.msra.mxu1 %v3256_v10  ;;  %v3259_v30 = vld [vmem:[#allocation11] sm:$0xff]   ;;  %v1679_v10 = vld [vmem:[#allocation14 + $0x120] sm:$0xff] }
 0x100   :  { %3008 = vmatprep.subr.bf16.mxu1 %v3514_v33 }
 0x102   :  { %2975 = vmatpush3.bf16.msra.mxu0 %v3249_v31  ;;  %v3260_v31 = vld [vmem:[#allocation13 + $0x70] ss:$8 sps:$4 sm:$0xff]  }
 0x103   :  { %3014 = vmatprep.subr.bf16.mxu0 %v3514_v33  ;;  %3009 = vmatpush3.bf16.msra.mxu1 %v3257_v11  ;;  %v2865_v11 = vcombine.high %v1675_v9, %v1679_v10 }
 0x104   :  { %1598 = vmatprep.subr.bf16.mxu1 %v3262_v32 }
 0x165   :  { %v987_v38 = vpop.f32.mrf.mxu0 }
 0x166   :  { %v1028_v39 = vpop.f32.mrf.mxu1  ;;  %v988_v53 = vadd.f32 %v987_v38, %v306_v51  ;;  %v3271_v38 = vld [vmem:[#allocation13 + $0x44] ss:$8 sps:$4 sm:$0xff]  }
 0x167   :  { %v989_v40 = vpop.f32.mrf.mxu0 }
 0x168   :  { %v1030_v41 = vpop.f32.mrf.mxu1  ;;  %v990_v54 = vadd.f32 %v989_v40, %v310_v52  ;;  %v1029_v55 = vadd.f32 %v1028_v39, %v988_v53  ;;  %v3269_v39 = vld [vmem:[#allocation13 + $0x40] ss:$8 sps:$4 sm:$0xff]   ;;  %v3274_v40 = vld [vmem:[#allocation13 + $0x34] ss:$8 sps:$4 sm:$0xff]  }
 0x169   :  { %v991_v42 = vpop.f32.mrf.mxu0 }
 0x16a   :  { %v1032_v43 = vpop.f32.mrf.mxu1  ;;  %v1031_v58 = vadd.f32 %v1030_v41, %v990_v54  ;;  %v3272_v41 = vld [vmem:[#allocation13 + $0x30] ss:$8 sps:$4 sm:$0xff]   ;;  %v3277_v42 = vld [vmem:[#allocation13 + $0x24] ss:$8 sps:$4 sm:$0xff]  }
 0x16b   :  { %v992_v44 = vpop.f32.mrf.mxu0  ;;  %v3275_v43 = vld [vmem:[#allocation13 + $0x20] ss:$8 sps:$4 sm:$0xff]   ;;  %v3283_v54 = vld [vmem:[#allocation13 + $0x4] ss:$8 sps:$4 sm:$0xff]  }
 0x16c   :  { %v1033_v45 = vpop.f32.mrf.mxu1  ;;  %v3280_v44 = vld [vmem:[#allocation13 + $0x14] ss:$8 sps:$4 sm:$0xff]  }
 0x16d   :  { %v3278_v45 = vld [vmem:[#allocation13 + $0x10] ss:$8 sps:$4 sm:$0xff]  }
 0x1a5   :  { %v1069_v56 = vpop.f32.mrf.mxu0 }
 0x1a6   :  { %v1110_v57 = vpop.f32.mrf.mxu1  ;;  %v1070_v59 = vadd.f32 %v1069_v56, %v1029_v55  ;;  %v3281_v55 = vld [vmem:[#allocation13] ss:$8 sps:$4 sm:$0xff]   ;;  %v3517_v56 = vmov 0  }
 0x1a7   :  { %v1071_v60 = vpop.f32.mrf.mxu0 }
 0x1a8   :  { %v1112_v61 = vpop.f32.mrf.mxu1  ;;  %v1111_v62 = vadd.f32 %v1110_v57, %v1070_v59  ;;  %v1072_v63 = vadd.f32 %v1071_v60, %v1031_v58  ;;  %v1699_v57 = vld [vmem:[#allocation14 + $0x1c0] sm:$0xff]  ;;  %v3664_v59 = vld [vmem:[#allocation14 + $0x1c8] sm:$0xff] }
 0x1a9   :  { %v1073_v0 = vpop.f32.mrf.mxu0  ;;  %v1703_v58 = vld [vmem:[#allocation14 + $0x1e0] sm:$0xff] }
 0x1aa   :  { %v1114_v1 = vpop.f32.mrf.mxu1  ;;  %v1113_v2 = vadd.f32 %v1112_v61, %v1072_v63  ;;  %v1117_v3 = vmax.f32 %v1111_v62, 0.0  ;;  %v2888_v60 = vcombine.low %v1699_v57, %v1703_v58  ;;  %v2889_v61 = vcombine.high %v1699_v57, %v1703_v58  ;;  %v3666_v62 = vld [vmem:[#allocation14 + $0x1e8] sm:$0xff]  ;;  %v1691_v63 = vld [vmem:[#allocation14 + $0x180] sm:$0xff] }
 0x1ab   :  { %v1074_v4 = vpop.f32.mrf.mxu0  ;;  %v1695_v0 = vld [vmem:[#allocation14 + $0x1a0] sm:$0xff]  ;;  %v2890_v1 = vcombine.low %v3664_v59, %v3666_v62 }
 0x1ac   :  { %v1115_v5 = vpop.f32.mrf.mxu1  ;;  %v1118_v6 = vmax.f32 %v1113_v2, 0.0  ;;  %v1119_v8 = vpack.c.bf16 %v1117_v3, %v1117_v3  ;;  %v2891_v2 = vcombine.high %v3664_v59, %v3666_v62  ;;  %v2881_v3 = vcombine.high %v1691_v63, %v1695_v0 }
 0x1ad   :  { %v2880_v4 = vcombine.low %v1691_v63, %v1695_v0  ;;  %v1683_v5 = vld [vmem:[#allocation14 + $0x140] sm:$0xff]  ;;  %v1696_v63 = vld [vmem:[#allocation14 + $0x1a8] sm:$0xff] }
 0x1ae   :  { %v1120_v7 = vpack.c.bf16 %v1118_v6, %v1118_v6  ;;  %v1687_v6 = vld [vmem:[#allocation14 + $0x160] sm:$0xff] }
 0x1b0   :  { %1288 = vmatprep.mubr.bf16.mxu0 %v1120_v7  ;;  %v2873_v7 = vcombine.high %v1683_v5, %v1687_v6 }
 0x1b1   :  { %1289 = vmatmul.mubr.bf16.vlgmr.msra.gmra.mxu0 %v1119_v8  ;;  %v2872_v8 = vcombine.low %v1683_v5, %v1687_v6  ;;  %v1684_v6 = vld [vmem:[#allocation14 + $0x148] sm:$0xff] }
 0x1b2   :  { %3018 = vmatprep.mubr.msk.bf16.mxu0 %vm3515_vm0, %v3514_v33  ;;  %3015 = vmatpush3.bf16.msra.mxu0 %v3258_v21  ;;  %v1651_v21 = vld [vmem:[#allocation14 + $0x40] sm:$0xff] }
 0x1b3   :  { %3016 = vmatprep.subr.bf16.mxu0 %v3514_v33  ;;  %v3263_v33 = vld [vmem:[#allocation13 + $0x60] ss:$8 sps:$4 sm:$0xff]  }
 0x1b6   :  { %3017 = vmatpush3.bf16.msra.mxu0 %v3259_v30  ;;  %v1767_v30 = vld [vmem:[#allocation14 + $0x3e0] sm:$0xff] }
 0x1b7   :  { %2453 = vmatprep.subr.bf16.mxu0 %v2889_v61  ;;  %v1692_v61 = vld [vmem:[#allocation14 + $0x188] sm:$0xff] }
 0x271   :  { %v2976_v12 = vpop.f32.mrf.mxu0 }
 0x273   :  { %v2977_v14 = vpop.f32.mrf.mxu0 }
 0x274   :  { %v2978_v15 = vadd.f32 %v2977_v14, %v2976_v12  ;;  %v2864_v12 = vcombine.low %v1675_v9, %v1679_v10  ;;  %v1671_v14 = vld [vmem:[#allocation14 + $0xe0] sm:$0xff]  ;;  %v1676_v10 = vld [vmem:[#allocation14 + $0x108] sm:$0xff] }
 0x275   :  { %v2979_v16 = vpop.f32.mrf.mxu0 }
 0x276   :  { %v1291_v17 = vadd.f32 %v2978_v15, %v2786_v13  ;;  %v1667_v13 = vld [vmem:[#allocation14 + $0xc0] sm:$0xff] }
 0x277   :  { %v2980_v18 = vpop.f32.mrf.mxu0  ;;  %v2857_v15 = vcombine.high %v1667_v13, %v1671_v14  ;;  %v2856_v16 = vcombine.low %v1667_v13, %v1671_v14  ;;  %v1668_v14 = vld [vmem:[#allocation14 + $0xc8] sm:$0xff] }
 0x278   :  { %v1296_v19 = vmax.f32 %v1291_v17, 0.0  ;;  %v1659_v17 = vld [vmem:[#allocation14 + $0x80] sm:$0xff] }
 0x279   :  { %v1663_v18 = vld [vmem:[#allocation14 + $0xa0] sm:$0xff] }
 0x27a   :  { %v1297_v20 = vpack.c.bf16 %v1296_v19, %v1296_v19  ;;  %v2849_v19 = vcombine.high %v1659_v17, %v1663_v18 }
 0x27c   :  { %3011 = vmatmul.mubr.bf16.vlgmr.msra.gmra.mxu1 %v1297_v20  ;;  %v2848_v20 = vcombine.low %v1659_v17, %v1663_v18  ;;  %v1660_v18 = vld [vmem:[#allocation14 + $0x88] sm:$0xff] }
 0x27d   :  { %1599 = vmatpush1.bf16.msra.mxu1 %v3260_v31  ;;  %1630 = vmatprep.mubr.bf16.mxu1 %v3517_v56  ;;  %v2812_v56 = vld [vmem:[%s3715_s9] ss:$0 sm:$0xff] }
 0x27e   :  { %1600 = vmatprep.subr.bf16.mxu1 %v3265_v34  ;;  %v1755_v34 = vld [vmem:[#allocation14 + $0x380] sm:$0xff] }
 0x281   :  { %1601 = vmatpush1.bf16.msra.mxu1 %v3263_v33  ;;  %v1759_v33 = vld [vmem:[#allocation14 + $0x3a0] sm:$0xff] }
 0x282   :  { %1602 = vmatprep.subr.bf16.mxu1 %v3268_v35  ;;  %v2945_v35 = vcombine.high %v1755_v34, %v1759_v33 }
 0x285   :  { %1603 = vmatpush1.bf16.msra.mxu1 %v3266_v37  ;;  %v1747_v37 = vld [vmem:[#allocation14 + $0x340] sm:$0xff] }
 0x286   :  { %1604 = vmatprep.subr.bf16.mxu1 %v3271_v38  ;;  %v1751_v38 = vld [vmem:[#allocation14 + $0x360] sm:$0xff] }
 0x289   :  { %1605 = vmatpush1.bf16.msra.mxu1 %v3269_v39  ;;  %v2937_v39 = vcombine.high %v1747_v37, %v1751_v38 }
 0x28a   :  { %1606 = vmatprep.subr.bf16.mxu1 %v3274_v40  ;;  %v2936_v40 = vcombine.low %v1747_v37, %v1751_v38 }
 0x28d   :  { %1607 = vmatpush1.bf16.msra.mxu1 %v3272_v41  ;;  %v1739_v41 = vld [vmem:[#allocation14 + $0x300] sm:$0xff] }
 0x28e   :  { %1608 = vmatprep.subr.bf16.mxu1 %v3277_v42  ;;  %v1743_v42 = vld [vmem:[#allocation14 + $0x320] sm:$0xff] }
 0x291   :  { %1609 = vmatpush1.bf16.msra.mxu1 %v3275_v43  ;;  %v2929_v43 = vcombine.high %v1739_v41, %v1743_v42 }
 0x292   :  { %1610 = vmatprep.subr.bf16.mxu1 %v3280_v44  ;;  %v2928_v44 = vcombine.low %v1739_v41, %v1743_v42 }
 0x295   :  { %1611 = vmatpush1.bf16.msra.mxu1 %v3278_v45  ;;  %v1731_v45 = vld [vmem:[#allocation14 + $0x2c0] sm:$0xff] }
 0x296   :  { %1612 = vmatprep.subr.bf16.mxu1 %v3283_v54 }
 0x299   :  { %1613 = vmatpush1.bf16.msra.mxu1 %v3281_v55 }
 0x29a   :  { %2494 = vmatprep.subr.bf16.mxu1 %v2891_v2 }
 0x33c   :  { %v1403_v23 = vpop.f32.mrf.mxu1 }
 0x33d   :  { %v1404_v24 = vadd.f32 %v2803_v22, %v1403_v23  ;;  %v1655_v22 = vld [vmem:[#allocation14 + $0x60] sm:$0xff] }
 0x33e   :  { %v3012_v25 = vpop.f32.mrf.mxu1  ;;  %v2841_v23 = vcombine.high %v1651_v21, %v1655_v22 }
 0x33f   :  { %v1410_v26 = vmul.f32 0.5, %v1404_v24  ;;  %1409 = vst [vmem:[#allocation17] sm:$0xff] %v1404_v24  ;;  %v1643_v25 = vld [vmem:[#allocation14] sm:$0xff] }
 0x340   :  { %v1406_v27 = vpop.f32.mrf.mxu1 }
 0x341   :  { %v1411_v28 = vmul.f32 1.442695, %v1410_v26  ;;  %v1647_v26 = vld [vmem:[#allocation14 + $0x20] sm:$0xff] }
 0x342   :  { %v3013_v29 = vpop.f32.mrf.mxu1  ;;  %v2833_v27 = vcombine.high %v1643_v25, %v1647_v26 }
 0x343   :  { %3284 = vpow2.f32 %v1411_v28  ;;  %v2832_v28 = vcombine.low %v1643_v25, %v1647_v26  ;;  %v1763_v29 = vld [vmem:[#allocation14 + $0x3c0] sm:$0xff] }
 0x344   :  { %v2953_v31 = vcombine.high %v1763_v29, %v1767_v30  ;;  %v2952_v32 = vcombine.low %v1763_v29, %v1767_v30 }
 0x350   :  { %v3285_v36 = vpop.eup %3284 }
 0x351   :  { %1415 = vrot.lane.b32.xlu0 %v3285_v36, %s3516_s5  ;;  %v2944_v36 = vcombine.low %v1755_v34, %v1759_v33 }
 0x3c3   :  { %v1416_v49 = vpop.permute.xlu0 %1415 }
 0x3c4   :  { %v1418_v51 = vmul.f32 %v1416_v49, %v1413_v46  ;;  %v1735_v46 = vld [vmem:[#allocation14 + $0x2e0] sm:$0xff] }
 0x3c5   :  { %v2921_v49 = vcombine.high %v1731_v45, %v1735_v46 }
 0x3c6   :  { %v1419_v52 = vadd.f32 %v1418_v51, %v1404_v24  ;;  %v2840_v24 = vcombine.low %v1651_v21, %v1655_v22  ;;  %v2920_v51 = vcombine.low %v1731_v45, %v1735_v46 }
 0x3c8   :  { %v1420_v53 = vpack.c.bf16 %v1419_v52, %v1419_v52  ;;  %v1723_v52 = vld [vmem:[#allocation14 + $0x280] sm:$0xff] }
 0x3ca   :  { %3019 = vmatmul.mubr.msk.bf16.vlgmr.msra.gmra.mxu0 %vm1444_vm1, %v1420_v53  ;;  %v1727_v53 = vld [vmem:[#allocation14 + $0x2a0] sm:$0xff] }
 0x3cb   :  { %2454 = vmatpush1.bf16.msra.mxu0 %v2888_v60  ;;  %v2913_v54 = vcombine.high %v1723_v52, %v1727_v53  ;;  %v2912_v55 = vcombine.low %v1723_v52, %v1727_v53 }
 0x3cc   :  { %2455 = vmatprep.subr.bf16.mxu0 %v2881_v3 }
 0x3cf   :  { %2456 = vmatpush1.bf16.msra.mxu0 %v2880_v4  ;;  %v2883_v4 = vcombine.high %v1692_v61, %v1696_v63 }
 0x3d0   :  { %2457 = vmatprep.subr.bf16.mxu0 %v2873_v7  ;;  %v1688_v7 = vld [vmem:[#allocation14 + $0x168] sm:$0xff] }
 0x3d1   :  { %v2875_v9 = vcombine.high %v1684_v6, %v1688_v7 }
 0x3d3   :  { %2458 = vmatpush1.bf16.msra.mxu0 %v2872_v8  ;;  %v2882_v8 = vcombine.low %v1692_v61, %v1696_v63 }
 0x3d4   :  { %2459 = vmatprep.subr.bf16.mxu0 %v2865_v11  ;;  %v1680_v11 = vld [vmem:[#allocation14 + $0x128] sm:$0xff] }
 0x3d5   :  { %v2867_v13 = vcombine.high %v1676_v10, %v1680_v11 }
 0x3d7   :  { %2460 = vmatpush1.bf16.msra.mxu0 %v2864_v12  ;;  %v2874_v12 = vcombine.low %v1684_v6, %v1688_v7  ;;  %v1712_v6 = vld [vmem:[#allocation14 + $0x228] sm:$0xff] }
 0x3d8   :  { %2461 = vmatprep.subr.bf16.mxu0 %v2857_v15  ;;  %v1672_v15 = vld [vmem:[#allocation14 + $0xe8] sm:$0xff] }
 0x3d9   :  { %v2859_v17 = vcombine.high %v1668_v14, %v1672_v15  ;;  %v2858_v59 = vcombine.low %v1668_v14, %v1672_v15  ;;  %v1706_v14 = vld [vmem:[#allocation14 + $0x1f8] sm:$0xff] }
 0x3db   :  { %2462 = vmatpush1.bf16.msra.mxu0 %v2856_v16  ;;  %v2866_v16 = vcombine.low %v1676_v10, %v1680_v11  ;;  %v1701_v10 = vld [vmem:[#allocation14 + $0x1d0] sm:$0xff] }
 0x3dc   :  { %2463 = vmatprep.subr.bf16.mxu0 %v2849_v19  ;;  %v1664_v19 = vld [vmem:[#allocation14 + $0xa8] sm:$0xff]  ;;  %v1705_v11 = vld [vmem:[#allocation14 + $0x1f0] sm:$0xff] }
 0x3dd   :  { %v2851_v62 = vcombine.high %v1660_v18, %v1664_v19  ;;  %v2850_v21 = vcombine.low %v1660_v18, %v1664_v19  ;;  %v2892_v15 = vcombine.low %v1701_v10, %v1705_v11  ;;  %v1506_v18 = vld [vmem:[%s3717_s11] sm:$0x3]  ;;  %s3518_s11 = smov [#allocation17]  }
 0x3de   :  { %v1511_v19 = vrot.slane %v1506_v18, %v3643_v48  ;;  %s2641_s17 = sshll.u32 %s3518_s11, 4  ;;  %s2642_s17 = int_to_ptr.vmem [resolvable:$true] %s2641_s17 }
 0x3df   :  { %2464 = vmatpush1.bf16.msra.mxu0 %v2848_v20  ;;  %v1656_v20 = vld [vmem:[#allocation14 + $0x68] sm:$0xff]  ;;  %s3446_s0 = scalar_lea.vmem %s2642_s17, 128  ;;  %p3451_p13 = scmp.lt.s32.totalorder %s2642_s17, %s2642_s17 }
 0x3e0   :  { %2465 = vmatprep.subr.bf16.mxu0 %v2841_v23  ;;  %v1644_v23 = vld [vmem:[#allocation14 + $0x8] sm:$0xff]  ;;  %p3447_p12 = scmp.ne.s32.totalorder %s2642_s17, %s3446_s0  ;;  %p3452_p0 = scmp.lt.s32.totalorder %s3446_s0, %s3446_s0 }
 0x3e2   :  { %p3453_p1 = por %p3452_p0, %p3451_p13 }
 0x3e3   :  { %2466 = vmatpush1.bf16.msra.mxu0 %v2840_v24  ;;  %v1648_v24 = vld [vmem:[#allocation14 + $0x28] sm:$0xff] }
 0x3e4   :  { %2467 = vmatprep.subr.bf16.mxu0 %v2833_v27  ;;  %v2835_v26 = vcombine.high %v1644_v23, %v1648_v24  ;;  %v1764_v27 = vld [vmem:[#allocation14 + $0x3c8] sm:$0xff]  ;;  %v2834_v29 = vcombine.low %v1644_v23, %v1648_v24  ;;  %p3454_p2 = pnand %p3453_p1, %p3447_p12 }
 0x3e7   :  { %2468 = vmatpush1.bf16.msra.mxu0 %v2832_v28  ;;  %v1768_v28 = vld [vmem:[#allocation14 + $0x3e8] sm:$0xff] }
 0x3e8   :  { %2469 = vmatprep.subr.bf16.mxu0 %v2953_v31  ;;  %v2955_v30 = vcombine.high %v1764_v27, %v1768_v28  ;;  %v1756_v31 = vld [vmem:[#allocation14 + $0x388] sm:$0xff]  ;;  %v2954_v34 = vcombine.low %v1764_v27, %v1768_v28  ;;  %v1697_v27 = vld [vmem:[#allocation14 + $0x1b0] sm:$0xff]  ;;  %v1694_v28 = vld [vmem:[#allocation14 + $0x198] sm:$0xff] }
 0x3eb   :  { %2470 = vmatpush2.bf16.msra.mxu0 %v2952_v32  ;;  %v1760_v32 = vld [vmem:[#allocation14 + $0x3a8] sm:$0xff] }
 0x3ec   :  { %2471 = vmatprep.subr.bf16.mxu0 %v2945_v35  ;;  %v2947_v33 = vcombine.high %v1756_v31, %v1760_v32  ;;  %v1748_v35 = vld [vmem:[#allocation14 + $0x348] sm:$0xff]  ;;  %v2946_v37 = vcombine.low %v1756_v31, %v1760_v32  ;;  %v1685_v32 = vld [vmem:[#allocation14 + $0x150] sm:$0xff] }
 0x3ef   :  { %2472 = vmatpush2.bf16.msra.mxu0 %v2944_v36  ;;  %v1752_v36 = vld [vmem:[#allocation14 + $0x368] sm:$0xff] }
 0x3f0   :  { %2473 = vmatprep.subr.bf16.mxu0 %v2937_v39  ;;  %v2939_v38 = vcombine.high %v1748_v35, %v1752_v36  ;;  %v1740_v39 = vld [vmem:[#allocation14 + $0x308] sm:$0xff]  ;;  %v2938_v41 = vcombine.low %v1748_v35, %v1752_v36  ;;  %v1689_v35 = vld [vmem:[#allocation14 + $0x170] sm:$0xff]  ;;  %v1686_v36 = vld [vmem:[#allocation14 + $0x158] sm:$0xff] }
 0x3f3   :  { %2474 = vmatpush2.bf16.msra.mxu0 %v2936_v40  ;;  %v1744_v40 = vld [vmem:[#allocation14 + $0x328] sm:$0xff] }
 0x3f4   :  { %2475 = vmatprep.subr.bf16.mxu0 %v2929_v43  ;;  %v2931_v42 = vcombine.high %v1740_v39, %v1744_v40  ;;  %v1732_v43 = vld [vmem:[#allocation14 + $0x2c8] sm:$0xff]  ;;  %v2930_v45 = vcombine.low %v1740_v39, %v1744_v40  ;;  %v2877_v40 = vcombine.high %v1685_v32, %v1689_v35 }
 0x3f7   :  { %2476 = vmatpush2.bf16.msra.mxu0 %v2928_v44  ;;  %v1736_v44 = vld [vmem:[#allocation14 + $0x2e8] sm:$0xff] }
 0x3f8   :  { %2477 = vmatprep.subr.bf16.mxu0 %v2921_v49  ;;  %v2923_v46 = vcombine.high %v1732_v43, %v1736_v44  ;;  %v1724_v49 = vld [vmem:[#allocation14 + $0x288] sm:$0xff]  ;;  %v2922_v52 = vcombine.low %v1732_v43, %v1736_v44  ;;  %v1681_v43 = vld [vmem:[#allocation14 + $0x130] sm:$0xff]  ;;  %v1678_v44 = vld [vmem:[#allocation14 + $0x118] sm:$0xff] }
 0x3fb   :  { %2478 = vmatpush2.bf16.msra.mxu0 %v2920_v51  ;;  %v1728_v51 = vld [vmem:[#allocation14 + $0x2a8] sm:$0xff] }
 0x3fc   :  { %2479 = vmatprep.subr.bf16.mxu0 %v2913_v54  ;;  %v2915_v53 = vcombine.high %v1724_v49, %v1728_v51  ;;  %v2914_v54 = vcombine.low %v1724_v49, %v1728_v51 }
 0x3ff   :  { %2480 = vmatpush2.bf16.msra.mxu0 %v2912_v55  ;;  %v1715_v55 = vld [vmem:[#allocation14 + $0x240] sm:$0xff] }
 0x48a   :  { %v1482_v57 = vpop.f32.mrf.mxu0 }
 0x48b   :  { %v1483_v58 = vadd.f32 %v2812_v56, %v1482_v57  ;;  %v1719_v56 = vld [vmem:[#allocation14 + $0x260] sm:$0xff]  ;;  %v1716_v57 = vld [vmem:[#allocation14 + $0x248] sm:$0xff] }
 0x48c   :  { %v3020_v60 = vpop.f32.mrf.mxu0  ;;  %v2904_v61 = vcombine.low %v1715_v55, %v1719_v56 }
 0x48d   :  { %v1488_v0 = vmax.f32 %v1483_v58, 0.0  ;;  %v2905_v58 = vcombine.high %v1715_v55, %v1719_v56  ;;  %v1720_v60 = vld [vmem:[#allocation14 + $0x268] sm:$0xff]  ;;  %v1670_v55 = vld [vmem:[#allocation14 + $0xd8] sm:$0xff] }
 0x48e   :  { %v1485_v2 = vpop.f32.mrf.mxu0  ;;  %v2906_v63 = vcombine.low %v1716_v57, %v1720_v60  ;;  %v1674_v56 = vld [vmem:[#allocation14 + $0xf8] sm:$0xff] }
 0x48f   :  { %v1489_v3 = vpack.c.bf16 %v1488_v0, %v1488_v0  ;;  %v2907_v0 = vcombine.high %v1716_v57, %v1720_v60  ;;  %2481 = vmatprep.subr.bf16.mxu0 %v2905_v58  ;;  %v1707_v2 = vld [vmem:[#allocation14 + $0x200] sm:$0xff] }
 0x490   :  { %v3021_v5 = vpop.f32.mrf.mxu0  ;;  %2482 = vmatpush2.bf16.msra.mxu0 %v2904_v61  ;;  %v2863_v61 = vcombine.high %v1670_v55, %v1674_v56 }
 0x491   :  { %1631 = vmatmul.mubr.bf16.vlgmr.msra.gmra.mxu1 %v1489_v3  ;;  %v1711_v3 = vld [vmem:[#allocation14 + $0x220] sm:$0xff] }
 0x492   :  { %2495 = vmatpush1.bf16.msra.mxu1 %v2890_v1  ;;  %v1652_v1 = vld [vmem:[#allocation14 + $0x48] sm:$0xff]  ;;  %v2897_v5 = vcombine.high %v1707_v2, %v1711_v3  ;;  %v2896_v7 = vcombine.low %v1707_v2, %v1711_v3  ;;  %v1662_v2 = vld [vmem:[#allocation14 + $0x98] sm:$0xff] }
 0x493   :  { %2496 = vmatprep.subr.bf16.mxu1 %v2883_v4  ;;  %v2843_v22 = vcombine.high %v1652_v1, %v1656_v20  ;;  %v2842_v25 = vcombine.low %v1652_v1, %v1656_v20  ;;  %v1708_v4 = vld [vmem:[#allocation14 + $0x208] sm:$0xff]  ;;  %v1666_v3 = vld [vmem:[#allocation14 + $0xb8] sm:$0xff] }
 0x494   :  { %2483 = vmatprep.subr.bf16.mxu0 %v2897_v5  ;;  %v2862_v5 = vcombine.low %v1670_v55, %v1674_v56 }
 0x495   :  { %2484 = vmatpush2.bf16.msra.mxu0 %v2896_v7  ;;  %v2855_v7 = vcombine.high %v1662_v2, %v1666_v3 }
 0x496   :  { %2497 = vmatpush1.bf16.msra.mxu1 %v2882_v8  ;;  %v2898_v8 = vcombine.low %v1708_v4, %v1712_v6 }
 0x497   :  { %2498 = vmatprep.subr.bf16.mxu1 %v2875_v9  ;;  %v2899_v9 = vcombine.high %v1708_v4, %v1712_v6 }
 0x49a   :  { %2499 = vmatpush1.bf16.msra.mxu1 %v2874_v12  ;;  %v1702_v12 = vld [vmem:[#allocation14 + $0x1d8] sm:$0xff] }
 0x49b   :  { %2500 = vmatprep.subr.bf16.mxu1 %v2867_v13  ;;  %v2893_v13 = vcombine.high %v1701_v10, %v1705_v11  ;;  %v1654_v10 = vld [vmem:[#allocation14 + $0x58] sm:$0xff] }
 0x49c   :  { %v1658_v11 = vld [vmem:[#allocation14 + $0x78] sm:$0xff] }
 0x49d   :  { %2535 = vmatprep.subr.bf16.mxu0 %v2893_v13  ;;  %v2854_v13 = vcombine.low %v1662_v2, %v1666_v3 }
 0x49e   :  { %2501 = vmatpush1.bf16.msra.mxu1 %v2866_v16  ;;  %v2894_v16 = vcombine.low %v1702_v12, %v1706_v14 }
 0x49f   :  { %2502 = vmatprep.subr.bf16.mxu1 %v2859_v17  ;;  %v2895_v17 = vcombine.high %v1702_v12, %v1706_v14 }
 0x4a2   :  { %2503 = vmatpush1.bf16.msra.mxu1 %v2858_v59  ;;  %v1515_v59 = vrot.slane %v1506_v18, %v3649_v50  ;;  %v1646_v18 = vld [vmem:[#allocation14 + $0x18] sm:$0xff] }
 0x4a3   :  { %2504 = vmatprep.subr.bf16.mxu1 %v2851_v62 }
 0x4a6   :  { %2505 = vmatpush1.bf16.msra.mxu1 %v2850_v21 }
 0x4a7   :  { %2506 = vmatprep.subr.bf16.mxu1 %v2843_v22 }
 0x4aa   :  { %2507 = vmatpush1.bf16.msra.mxu1 %v2842_v25  ;;  %v1693_v25 = vld [vmem:[#allocation14 + $0x190] sm:$0xff] }
 0x4ab   :  { %2508 = vmatprep.subr.bf16.mxu1 %v2835_v26 }
 0x4ae   :  { %2509 = vmatpush1.bf16.msra.mxu1 %v2834_v29  ;;  %v1698_v29 = vld [vmem:[#allocation14 + $0x1b8] sm:$0xff] }
 0x4af   :  { %2510 = vmatprep.subr.bf16.mxu1 %v2955_v30  ;;  %v2886_v39 = vcombine.low %v1694_v28, %v1698_v29 }
 0x4b2   :  { %2511 = vmatpush2.bf16.msra.mxu1 %v2954_v34  ;;  %v2885_v34 = vcombine.high %v1693_v25, %v1697_v27 }
 0x4b3   :  { %2512 = vmatprep.subr.bf16.mxu1 %v2947_v33  ;;  %v2887_v33 = vcombine.high %v1694_v28, %v1698_v29  ;;  %v1757_v29 = vld [vmem:[#allocation14 + $0x390] sm:$0xff] }
 0x4b6   :  { %2513 = vmatpush2.bf16.msra.mxu1 %v2946_v37  ;;  %v1690_v37 = vld [vmem:[#allocation14 + $0x178] sm:$0xff] }
 0x4b7   :  { %2514 = vmatprep.subr.bf16.mxu1 %v2939_v38  ;;  %v2884_v38 = vcombine.low %v1693_v25, %v1697_v27  ;;  %v2878_v49 = vcombine.low %v1686_v36, %v1690_v37 }
 0x4ba   :  { %2515 = vmatpush2.bf16.msra.mxu1 %v2938_v41  ;;  %v2879_v41 = vcombine.high %v1686_v36, %v1690_v37 }
 0x4bb   :  { %2516 = vmatprep.subr.bf16.mxu1 %v2931_v42  ;;  %v1677_v42 = vld [vmem:[#allocation14 + $0x110] sm:$0xff] }
 0x4bc   :  { %v2869_v51 = vcombine.high %v1677_v42, %v1681_v43  ;;  %v2868_v57 = vcombine.low %v1677_v42, %v1681_v43 }
 0x4be   :  { %2517 = vmatpush2.bf16.msra.mxu1 %v2930_v45  ;;  %v1682_v45 = vld [vmem:[#allocation14 + $0x138] sm:$0xff] }
 0x4bf   :  { %2518 = vmatprep.subr.bf16.mxu1 %v2923_v46  ;;  %v2876_v46 = vcombine.low %v1685_v32, %v1689_v35  ;;  %v2870_v58 = vcombine.low %v1678_v44, %v1682_v45  ;;  %v1758_v32 = vld [vmem:[#allocation14 + $0x398] sm:$0xff] }
 0x4c2   :  { %2519 = vmatpush2.bf16.msra.mxu1 %v2922_v52  ;;  %v2871_v52 = vcombine.high %v1678_v44, %v1682_v45 }
 0x4c3   :  { %2520 = vmatprep.subr.bf16.mxu1 %v2915_v53  ;;  %v1669_v53 = vld [vmem:[#allocation14 + $0xd0] sm:$0xff] }
 0x4c6   :  { %2521 = vmatpush2.bf16.msra.mxu1 %v2914_v54  ;;  %v1673_v54 = vld [vmem:[#allocation14 + $0xf0] sm:$0xff] }
 0x4c7   :  { %2522 = vmatprep.subr.bf16.mxu1 %v2907_v0  ;;  %v2861_v60 = vcombine.high %v1669_v53, %v1673_v54  ;;  %v1665_v0 = vld [vmem:[#allocation14 + $0xb0] sm:$0xff]  ;;  %v2860_v4 = vcombine.low %v1669_v53, %v1673_v54 }
 0x4ca   :  { %2523 = vmatpush2.bf16.msra.mxu1 %v2906_v63  ;;  %v1661_v63 = vld [vmem:[#allocation14 + $0x90] sm:$0xff] }
 0x4cb   :  { %2524 = vmatprep.subr.bf16.mxu1 %v2899_v9  ;;  %v2853_v6 = vcombine.high %v1661_v63, %v1665_v0  ;;  %v1657_v9 = vld [vmem:[#allocation14 + $0x70] sm:$0xff]  ;;  %v2852_v12 = vcombine.low %v1661_v63, %v1665_v0 }
 0x4ce   :  { %2525 = vmatpush2.bf16.msra.mxu1 %v2898_v8  ;;  %v1653_v8 = vld [vmem:[#allocation14 + $0x50] sm:$0xff] }
 0x4cf   :  { %2576 = vmatprep.subr.bf16.mxu1 %v2895_v17  ;;  %v2845_v14 = vcombine.high %v1653_v8, %v1657_v9  ;;  %v1649_v17 = vld [vmem:[#allocation14 + $0x30] sm:$0xff] }
 0x551   :  { %v1632_v62 = vpop.f32.mrf.mxu1 }
 0x552   :  { %v1633_v1 = vadd.f32 %v1632_v62, %v1511_v19  ;;  %v1650_v19 = vld [vmem:[#allocation14 + $0x38] sm:$0xff]  ;;  %v2846_v62 = vcombine.low %v1654_v10, %v1658_v11 }
 0x553   :  { %v1634_v20 = vpop.f32.mrf.mxu1 }
 0x554   :  { %v1635_v21 = vadd.f32 %v1634_v20, %v1515_v59  ;;  %v1639_v22 = vmax.f32 %v1633_v1, 0.0  ;;  %v2844_v59 = vcombine.low %v1653_v8, %v1657_v9  ;;  %v2839_v20 = vcombine.high %v1646_v18, %v1650_v19 }
 0x555   :  { %v1636_v23 = vpop.f32.mrf.mxu1 }
 0x556   :  { %v1640_v24 = vmax.f32 %v1635_v21, 0.0  ;;  %v3683_v31 = vpack.c.bf16 %v1639_v22, %v1639_v22  ;;  %v1765_v21 = vld [vmem:[#allocation14 + $0x3d0] sm:$0xff]  ;;  %v1766_v23 = vld [vmem:[#allocation14 + $0x3d8] sm:$0xff] }
 0x557   :  { %v1637_v26 = vpop.f32.mrf.mxu1  ;;  %v1769_v22 = vld [vmem:[#allocation14 + $0x3f0] sm:$0xff] }
 0x558   :  { %v1642_v30 = vpack.c.bf16 %v1640_v24, %v1640_v24  ;;  %v1770_v24 = vld [vmem:[#allocation14 + $0x3f8] sm:$0xff]  ;;  %v2838_v26 = vcombine.low %v1646_v18, %v1650_v19  ;;  %v2957_v27 = vcombine.high %v1765_v21, %v1769_v22 }
 0x559   :  { %v2959_v28 = vcombine.high %v1766_v23, %v1770_v24  ;;  %v2958_v35 = vcombine.low %v1766_v23, %v1770_v24 }
 0x55a   :  { %2485 = vmatprep.mubr.bf16.mxu0 %v1642_v30  ;;  %2526 = vmatprep.mubr.bf16.mxu1 %v1642_v30 }
 0x55b   :  { %2486 = vmatmul.mubr.bf16.vlgmr.msra.gmra.mxu0 %v3683_v31  ;;  %2527 = vmatmul.mubr.bf16.vlgmr.msra.gmra.mxu1 %v3683_v31 }
 0x55c   :  { %2536 = vmatpush1.bf16.msra.mxu0 %v2892_v15  ;;  %2577 = vmatpush1.bf16.msra.mxu1 %v2894_v16  ;;  %v2847_v15 = vcombine.high %v1654_v10, %v1658_v11  ;;  %v1645_v16 = vld [vmem:[#allocation14 + $0x10] sm:$0xff] }
 0x55d   :  { %2567 = vmatprep.mubr.bf16.mxu0 %v1642_v30  ;;  %2608 = vmatprep.mubr.bf16.mxu1 %v1642_v30  ;;  %v2837_v1 = vcombine.high %v1645_v16, %v1649_v17  ;;  %v2836_v25 = vcombine.low %v1645_v16, %v1649_v17  ;;  %v1761_v30 = vld [vmem:[#allocation14 + $0x3b0] sm:$0xff] }
 0x55e   :  { %2537 = vmatprep.subr.bf16.mxu0 %v2885_v34  ;;  %2578 = vmatprep.subr.bf16.mxu1 %v2887_v33  ;;  %v1762_v34 = vld [vmem:[#allocation14 + $0x3b8] sm:$0xff]  ;;  %v2956_v33 = vcombine.low %v1765_v21, %v1769_v22  ;;  %v2949_v36 = vcombine.high %v1757_v29, %v1761_v30  ;;  %v2948_v42 = vcombine.low %v1757_v29, %v1761_v30 }
 0x55f   :  { %v2951_v37 = vcombine.high %v1758_v32, %v1762_v34  ;;  %v2950_v43 = vcombine.low %v1758_v32, %v1762_v34 }
 0x560   :  { %2538 = vmatpush1.bf16.msra.mxu0 %v2884_v38  ;;  %2579 = vmatpush1.bf16.msra.mxu1 %v2886_v39  ;;  %v1749_v38 = vld [vmem:[#allocation14 + $0x350] sm:$0xff] }
 0x561   :  { %2539 = vmatprep.subr.bf16.mxu0 %v2877_v40  ;;  %2580 = vmatprep.subr.bf16.mxu1 %v2879_v41  ;;  %v1753_v39 = vld [vmem:[#allocation14 + $0x370] sm:$0xff]  ;;  %v1750_v40 = vld [vmem:[#allocation14 + $0x358] sm:$0xff] }
 0x562   :  { %v1754_v41 = vld [vmem:[#allocation14 + $0x378] sm:$0xff]  ;;  %v2941_v44 = vcombine.high %v1749_v38, %v1753_v39  ;;  %v2940_v53 = vcombine.low %v1749_v38, %v1753_v39 }
 0x563   :  { %v2943_v45 = vcombine.high %v1750_v40, %v1754_v41  ;;  %v2942_v54 = vcombine.low %v1750_v40, %v1754_v41 }
 0x564   :  { %2540 = vmatpush1.bf16.msra.mxu0 %v2876_v46  ;;  %2581 = vmatpush1.bf16.msra.mxu1 %v2878_v49  ;;  %v1741_v46 = vld [vmem:[#allocation14 + $0x310] sm:$0xff] }
 0x565   :  { %2541 = vmatprep.subr.bf16.mxu0 %v2869_v51  ;;  %2582 = vmatprep.subr.bf16.mxu1 %v2871_v52  ;;  %v1745_v49 = vld [vmem:[#allocation14 + $0x330] sm:$0xff]  ;;  %v1742_v51 = vld [vmem:[#allocation14 + $0x318] sm:$0xff] }
 0x566   :  { %v1746_v52 = vld [vmem:[#allocation14 + $0x338] sm:$0xff]  ;;  %v2933_v55 = vcombine.high %v1741_v46, %v1745_v49  ;;  %v2932_v63 = vcombine.low %v1741_v46, %v1745_v49 }
 0x567   :  { %v2935_v56 = vcombine.high %v1742_v51, %v1746_v52  ;;  %v2934_v0 = vcombine.low %v1742_v51, %v1746_v52 }
 0x568   :  { %2542 = vmatpush1.bf16.msra.mxu0 %v2868_v57  ;;  %2583 = vmatpush1.bf16.msra.mxu1 %v2870_v58  ;;  %v1733_v57 = vld [vmem:[#allocation14 + $0x2d0] sm:$0xff] }
 0x569   :  { %2543 = vmatprep.subr.bf16.mxu0 %v2861_v60  ;;  %2584 = vmatprep.subr.bf16.mxu1 %v2863_v61  ;;  %v1737_v58 = vld [vmem:[#allocation14 + $0x2f0] sm:$0xff]  ;;  %v1734_v60 = vld [vmem:[#allocation14 + $0x2d8] sm:$0xff] }
 0x56a   :  { %v1738_v61 = vld [vmem:[#allocation14 + $0x2f8] sm:$0xff]  ;;  %v2925_v2 = vcombine.high %v1733_v57, %v1737_v58  ;;  %v2924_v8 = vcombine.low %v1733_v57, %v1737_v58 }
 0x56b   :  { %v2927_v3 = vcombine.high %v1734_v60, %v1738_v61  ;;  %v2926_v9 = vcombine.low %v1734_v60, %v1738_v61 }
 0x56c   :  { %2544 = vmatpush1.bf16.msra.mxu0 %v2860_v4  ;;  %2585 = vmatpush1.bf16.msra.mxu1 %v2862_v5  ;;  %v1725_v4 = vld [vmem:[#allocation14 + $0x290] sm:$0xff] }
 0x56d   :  { %2545 = vmatprep.subr.bf16.mxu0 %v2853_v6  ;;  %2586 = vmatprep.subr.bf16.mxu1 %v2855_v7  ;;  %v1729_v5 = vld [vmem:[#allocation14 + $0x2b0] sm:$0xff]  ;;  %v1726_v6 = vld [vmem:[#allocation14 + $0x298] sm:$0xff] }
 0x56e   :  { %v1730_v7 = vld [vmem:[#allocation14 + $0x2b8] sm:$0xff]  ;;  %v2917_v10 = vcombine.high %v1725_v4, %v1729_v5  ;;  %v2916_v16 = vcombine.low %v1725_v4, %v1729_v5 }
 0x56f   :  { %v2919_v11 = vcombine.high %v1726_v6, %v1730_v7  ;;  %v2918_v17 = vcombine.low %v1726_v6, %v1730_v7 }
 0x570   :  { %2546 = vmatpush1.bf16.msra.mxu0 %v2852_v12  ;;  %2587 = vmatpush1.bf16.msra.mxu1 %v2854_v13  ;;  %v1717_v12 = vld [vmem:[#allocation14 + $0x250] sm:$0xff] }
 0x571   :  { %2547 = vmatprep.subr.bf16.mxu0 %v2845_v14  ;;  %2588 = vmatprep.subr.bf16.mxu1 %v2847_v15  ;;  %v1721_v13 = vld [vmem:[#allocation14 + $0x270] sm:$0xff]  ;;  %v1718_v14 = vld [vmem:[#allocation14 + $0x258] sm:$0xff] }
 0x572   :  { %v1722_v15 = vld [vmem:[#allocation14 + $0x278] sm:$0xff]  ;;  %v2909_v18 = vcombine.high %v1717_v12, %v1721_v13  ;;  %v2908_v21 = vcombine.low %v1717_v12, %v1721_v13 }
 0x573   :  { %v2911_v19 = vcombine.high %v1718_v14, %v1722_v15  ;;  %v2910_v22 = vcombine.low %v1718_v14, %v1722_v15 }
 0x574   :  { %2548 = vmatpush1.bf16.msra.mxu0 %v2844_v59  ;;  %2589 = vmatpush1.bf16.msra.mxu1 %v2846_v62  ;;  %v1709_v59 = vld [vmem:[#allocation14 + $0x210] sm:$0xff] }
 0x575   :  { %2549 = vmatprep.subr.bf16.mxu0 %v2837_v1  ;;  %2590 = vmatprep.subr.bf16.mxu1 %v2839_v20  ;;  %v1713_v62 = vld [vmem:[#allocation14 + $0x230] sm:$0xff]  ;;  %v1710_v1 = vld [vmem:[#allocation14 + $0x218] sm:$0xff] }
 0x576   :  { %v1714_v20 = vld [vmem:[#allocation14 + $0x238] sm:$0xff]  ;;  %v2901_v23 = vcombine.high %v1709_v59, %v1713_v62 }
 0x577   :  { %v2903_v24 = vcombine.high %v1710_v1, %v1714_v20 }
 0x578   :  { %2550 = vmatpush1.bf16.msra.mxu0 %v2836_v25  ;;  %2591 = vmatpush1.bf16.msra.mxu1 %v2838_v26  ;;  %v2900_v25 = vcombine.low %v1709_v59, %v1713_v62  ;;  %v2902_v26 = vcombine.low %v1710_v1, %v1714_v20 }
 0x579   :  { %2551 = vmatprep.subr.bf16.mxu0 %v2957_v27  ;;  %2592 = vmatprep.subr.bf16.mxu1 %v2959_v28 }
 0x57c   :  { %2552 = vmatpush2.bf16.msra.mxu0 %v2956_v33  ;;  %2593 = vmatpush2.bf16.msra.mxu1 %v2958_v35 }
 0x57d   :  { %2553 = vmatprep.subr.bf16.mxu0 %v2949_v36  ;;  %2594 = vmatprep.subr.bf16.mxu1 %v2951_v37 }
 0x580   :  { %2554 = vmatpush2.bf16.msra.mxu0 %v2948_v42  ;;  %2595 = vmatpush2.bf16.msra.mxu1 %v2950_v43 }
 0x581   :  { %2555 = vmatprep.subr.bf16.mxu0 %v2941_v44  ;;  %2596 = vmatprep.subr.bf16.mxu1 %v2943_v45 }
 0x584   :  { %2556 = vmatpush2.bf16.msra.mxu0 %v2940_v53  ;;  %2597 = vmatpush2.bf16.msra.mxu1 %v2942_v54 }
 0x585   :  { %2557 = vmatprep.subr.bf16.mxu0 %v2933_v55  ;;  %2598 = vmatprep.subr.bf16.mxu1 %v2935_v56 }
 0x588   :  { %2558 = vmatpush2.bf16.msra.mxu0 %v2932_v63  ;;  %2599 = vmatpush2.bf16.msra.mxu1 %v2934_v0 }
 0x589   :  { %2559 = vmatprep.subr.bf16.mxu0 %v2925_v2  ;;  %2600 = vmatprep.subr.bf16.mxu1 %v2927_v3 }
 0x58c   :  { %2560 = vmatpush2.bf16.msra.mxu0 %v2924_v8  ;;  %2601 = vmatpush2.bf16.msra.mxu1 %v2926_v9 }
 0x58d   :  { %2561 = vmatprep.subr.bf16.mxu0 %v2917_v10  ;;  %2602 = vmatprep.subr.bf16.mxu1 %v2919_v11 }
 0x590   :  { %2562 = vmatpush2.bf16.msra.mxu0 %v2916_v16  ;;  %2603 = vmatpush2.bf16.msra.mxu1 %v2918_v17 }
 0x591   :  { %2563 = vmatprep.subr.bf16.mxu0 %v2909_v18  ;;  %2604 = vmatprep.subr.bf16.mxu1 %v2911_v19 }
 0x594   :  { %2564 = vmatpush2.bf16.msra.mxu0 %v2908_v21  ;;  %2605 = vmatpush2.bf16.msra.mxu1 %v2910_v22 }
 0x595   :  { %2565 = vmatprep.subr.bf16.mxu0 %v2901_v23  ;;  %2606 = vmatprep.subr.bf16.mxu1 %v2903_v24 }
 0x598   :  { %2566 = vmatpush2.bf16.msra.mxu0 %v2900_v25  ;;  %2607 = vmatpush2.bf16.msra.mxu1 %v2902_v26 }
 0x59b   :  { %2568 = vmatmul.mubr.bf16.vlgmr.msra.gmra.mxu0 %v3683_v31  ;;  %2609 = vmatmul.mubr.bf16.vlgmr.msra.gmra.mxu1 %v3683_v31 }
 0x59c   :  { %3457 = shalt.err (!%p3454_p2)
}
 0x59d   :  { %2644 = dma.vmem_to_hbm [thread:$0]  %s2642_s17, 128, %s3721_s15, [#allocation18]   ;;  %v1783_v27 = vsub.s32 2, %v3640_v47  ;;  %v1771_v31 = vld [vmem:[%s3719_s13] sm:$0xff]  ;;  %v1787_v28 = vsub.s32 3, %v3640_v47  ;;  %v1791_v45 = vsub.s32 4, %v3640_v47 }
 0x59e   :  { %v1776_v29 = vrot.slane %v1771_v31, %v3643_v48  ;;  %v1780_v32 = vrot.slane %v1771_v31, %v3649_v50  ;;  %v1799_v50 = vsub.s32 6, %v3640_v47  ;;  %v1795_v46 = vsub.s32 5, %v3640_v47  ;;  %s3519_s13 = smov [#allocation16]  }
 0x59f   :  { %v1784_v30 = vrot.slane %v1771_v31, %v1783_v27  ;;  %v1788_v34 = vrot.slane %v1771_v31, %v1787_v28  ;;  %v1803_v49 = vsub.s32 7, %v3640_v47  ;;  %v1792_v51 = vrot.slane %v1771_v31, %v1791_v45  ;;  %s2631_s15 = sshll.u32 %s3519_s13, 4  ;;  %s2632_s15 = int_to_ptr.vmem [resolvable:$true] %s2631_s15 }
 0x5a0   :  { %v1800_v52 = vrot.slane %v1771_v31, %v1799_v50  ;;  %v1796_v53 = vrot.slane %v1771_v31, %v1795_v46  ;;  %s3466_s2 = scalar_lea.vmem %s2632_s15, 1024  ;;  %p3471_p4 = scmp.lt.s32.totalorder %s2632_s15, %s2632_s15 }
 0x5a1   :  { %v1804_v54 = vrot.slane %v1771_v31, %v1803_v49  ;;  %p3467_p3 = scmp.ne.s32.totalorder %s2632_s15, %s3466_s2  ;;  %p3472_p5 = scmp.lt.s32.totalorder %s3466_s2, %s3466_s2 }
 0x5a3   :  { %p3473_p6 = por %p3472_p5, %p3471_p4 }
 0x5a5   :  { %p3474_p7 = pnand %p3473_p6, %p3467_p3 }
 0x61b   :  { %v2487_v33 = vpop.f32.mrf.mxu0  ;;  %v2528_v35 = vpop.f32.mrf.mxu1 }
 0x61c   :  { %v2488_v36 = vadd.f32 %v2487_v33, %v1776_v29  ;;  %v2529_v37 = vadd.f32 %v2528_v35, %v1784_v30 }
 0x61d   :  { %v2489_v38 = vpop.f32.mrf.mxu0  ;;  %v2530_v39 = vpop.f32.mrf.mxu1 }
 0x61e   :  { %2617 = vst [vmem:[#allocation16] sm:$0xff] %v2488_v36  ;;  %2619 = vst [vmem:[#allocation16 + $0x10] sm:$0xff] %v2529_v37  ;;  %v2490_v40 = vadd.f32 %v2489_v38, %v1780_v32  ;;  %v2531_v41 = vadd.f32 %v2530_v39, %v1788_v34 }
 0x61f   :  { %v2491_v42 = vpop.f32.mrf.mxu0  ;;  %v2532_v43 = vpop.f32.mrf.mxu1 }
 0x620   :  { %2618 = vst [vmem:[#allocation16 + $0x8] sm:$0xff] %v2490_v40  ;;  %2620 = vst [vmem:[#allocation16 + $0x18] sm:$0xff] %v2531_v41 }
 0x621   :  { %v2492_v44 = vpop.f32.mrf.mxu0  ;;  %v2533_v48 = vpop.f32.mrf.mxu1 }
 0x65b   :  { %v2569_v55 = vpop.f32.mrf.mxu0  ;;  %v2610_v56 = vpop.f32.mrf.mxu1 }
 0x65c   :  { %v2570_v57 = vadd.f32 %v2569_v55, %v1792_v51  ;;  %v2611_v58 = vadd.f32 %v2610_v56, %v1800_v52 }
 0x65d   :  { %v2571_v60 = vpop.f32.mrf.mxu0  ;;  %v2612_v61 = vpop.f32.mrf.mxu1 }
 0x65e   :  { %2621 = vst [vmem:[#allocation16 + $0x20] sm:$0xff] %v2570_v57  ;;  %2623 = vst [vmem:[#allocation16 + $0x30] sm:$0xff] %v2611_v58  ;;  %v2572_v63 = vadd.f32 %v2571_v60, %v1796_v53  ;;  %v2613_v0 = vadd.f32 %v2612_v61, %v1804_v54 }
 0x65f   :  { %v2573_v2 = vpop.f32.mrf.mxu0  ;;  %v2614_v3 = vpop.f32.mrf.mxu1 }
 0x660   :  { %2622 = vst [vmem:[#allocation16 + $0x28] sm:$0xff] %v2572_v63  ;;  %2624 = vst [vmem:[#allocation16 + $0x38] sm:$0xff] %v2613_v0 }
 0x661   :  { %v2574_v47 = vpop.f32.mrf.mxu0  ;;  %v2615_v4 = vpop.f32.mrf.mxu1 }
 0x662   :  { %3477 = shalt.err (!%p3474_p7)
}
 0x663   :  { %2634 = dma.vmem_to_hbm [thread:$0]  %s2632_s15, 1024, %s3720_s14, [#allocation4]  }
 0x664   :  { %3496 = dma.done.wait [#allocation4], 1024  }
 0x665   :  { %3497 = vsyncadd [#allocation4], 4294966272 }
 0x666   :  { %3498 = dma.done.wait [#allocation18], 128  }
 0x667   :  { %3499 = vsyncadd [#allocation18], 4294967168 }
 0x668   :  { %2651 = vsyncpa [#allocation3], 1 }
 0x669   :  { %2652 = vsyncpa [#allocation6], 1 }
 0x66a   :  { %2653 = vsyncpa [#allocation9], 1 }
 0x66b   :  { %2654 = vsyncpa [#allocation12], 1 }
 0x66c   :  { %2655 = vsyncpa [#allocation15], 1 }
 0x66d   :  { %2656 = vsyncpa [#allocation4], 1 }
 0x66e   :  { %2657 = vsyncpa [#allocation18], 1 }

</bundles_post_ra>
